<compile_context>
chip_gen: v5e
topology: v5e:2x2
jax: 0.10.0
libtpu: 0.0.40
codegen_flags: <defaults>
</compile_context>

<pallas_src>
import functools

import jax
import jax.numpy as jnp
import numpy as np
from jax.experimental import pallas as pl
from jax.experimental.pallas import tpu as pltpu

_HB = 128  # lane-aligned head block width (mu / logvar / pose / latent blocks)


# ---------------------------------------------------------------------------
# Small helpers
# ---------------------------------------------------------------------------

def _round_up(x, m):
    return ((x + m - 1) // m) * m


def _cparams(semantics):
    return pltpu.CompilerParams(dimension_semantics=semantics,
                                vmem_limit_bytes=48 * 1024 * 1024)


def _pick_tile_m(M, max_tile):
    # single tile (8-aligned) when it fits, else a 256-aligned tile.
    return _round_up(M, 8) if M <= max_tile else max_tile


# ---------------------------------------------------------------------------
# Pallas kernels
# ---------------------------------------------------------------------------

def _gemm_relu_stats_kernel(x_ref, w_ref, b_ref, y_ref, stats_ref, *,
                            tm, m_total, need_mask):
    """Pass 1: y = relu(x @ w + b) (bf16 out) + per-tile channel sum / sum-sq."""
    y = jnp.dot(x_ref[...], w_ref[...], preferred_element_type=jnp.float32)
    y = jnp.maximum(y + b_ref[...], 0.0)
    if need_mask:  # exclude padded rows from the BN statistics
        row = pl.program_id(0) * tm + jax.lax.broadcasted_iota(
            jnp.int32, y.shape, 0)
        ym = jnp.where(row < m_total, y, 0.0)
    else:
        ym = y
    c1 = jnp.sum(ym, axis=0, keepdims=True)
    c2 = jnp.sum(ym * ym, axis=0, keepdims=True)
    stats_ref[...] = jnp.concatenate(
        [c1, c2, jnp.zeros((6, y.shape[1]), jnp.float32)], axis=0)
    y_ref[...] = y.astype(y_ref.dtype)


def _scale_shift_kernel(y_ref, sc_ref, sh_ref, o_ref):
    """Pass 2: per-channel affine normalization (BN apply)."""
    o_ref[...] = (y_ref[...].astype(jnp.float32) * sc_ref[...]
                  + sh_ref[...]).astype(o_ref.dtype)


def _gemm_bias_act_kernel(x_ref, w_ref, b_ref, o_ref, *, act):
    """y = act(x @ w + b); bf16 operands, f32 MXU accumulation."""
    y = jnp.dot(x_ref[...], w_ref[...], preferred_element_type=jnp.float32)
    y = y + b_ref[...]
    if act == "sigmoid":
        # EUP tanh instead of exp + VPU divide; clamp keeps output in [0, 1].
        y = jnp.clip(0.5 * jnp.tanh(0.5 * y) + 0.5, 0.0, 1.0)
    o_ref[...] = y.astype(o_ref.dtype)


def _heads_kernel(h_ref, wh_ref, bh_ref, eps_ref, wd_ref, bd_ref,
                  lat_ref, g_ref):
    """Fused mu/logvar/pose heads GEMM + reparametrisation + decoder FC.

    Head columns are laid out in 128-lane blocks [mu | logvar | pose]; padding
    columns have zero weight/bias, so exp(0.5*0)=1 times zero-padded eps keeps
    the latent padding at exactly zero."""
    heads = jnp.dot(h_ref[...], wh_ref[...],
                    preferred_element_type=jnp.float32) + bh_ref[...]
    mu = heads[:, 0:_HB]
    logvar = heads[:, _HB:2 * _HB]
    pose = heads[:, 2 * _HB:3 * _HB]
    latent = mu + eps_ref[...] * jnp.exp(0.5 * logvar)
    lat_ref[...] = jnp.concatenate([heads, latent], axis=-1)
    z = jnp.concatenate([latent, pose], axis=-1).astype(jnp.bfloat16)
    g = jnp.dot(z, wd_ref[...], preferred_element_type=jnp.float32) + bd_ref[...]
    g_ref[...] = g.astype(g_ref.dtype)


# ---------------------------------------------------------------------------
# Kernel wrappers
# ---------------------------------------------------------------------------

def gemm_bias_act(x, w, b, act="none", out_dtype=jnp.float32, max_tile_m=1024):
    """y = act(x @ w + b).  x:(M,K) bf16, w:(K,ncols) bf16, b:(1,ncols) f32.
    ncols is already lane-dense (multiple of 128); M tiled "parallel"."""
    M, K = x.shape
    ncols = w.shape[1]
    tm = _pick_tile_m(M, max_tile_m)
    mpad = _round_up(M, tm)
    xp = x if mpad == M else jnp.pad(x, ((0, mpad - M), (0, 0)))
    y = pl.pallas_call(
        functools.partial(_gemm_bias_act_kernel, act=act),
        out_shape=jax.ShapeDtypeStruct((mpad, ncols), out_dtype),
        grid=(mpad // tm,),
        in_specs=[
            pl.BlockSpec((tm, K), lambda i: (i, 0)),
            pl.BlockSpec((K, ncols), lambda i: (0, 0)),
            pl.BlockSpec((1, ncols), lambda i: (0, 0)),
        ],
        out_specs=pl.BlockSpec((tm, ncols), lambda i: (i, 0)),
        compiler_params=_cparams(("parallel",)),
    )(xp, w, b)
    return y[:M]


def _gemm_relu_bn_twopass(cols, wmat, bias, gamma_c, beta_c, *, groups,
                          eps=1e-5, tile_m=512):
    """Fused conv-GEMM -> bias -> ReLU -> BatchNorm2d, M-tiled two-pass.

    cols:(M,K) bf16, wmat:(K, groups*cpad) bf16, bias:(1, groups*cpad) f32,
    gamma_c/beta_c:(cpad,) f32.  Returns (M, groups*cpad) bf16."""
    M, K = cols.shape
    ncols = wmat.shape[1]
    cpad = ncols // groups
    tm = _pick_tile_m(M, tile_m)
    mpad = _round_up(M, tm)
    xp = cols if mpad == M else jnp.pad(cols, ((0, mpad - M), (0, 0)))
    n_tiles = mpad // tm

    # ---- pass 1: GEMM + bias + ReLU + per-tile channel sum / sum-sq ----
    y, stats = pl.pallas_call(
        functools.partial(_gemm_relu_stats_kernel, tm=tm, m_total=M,
                          need_mask=(mpad != M)),
        out_shape=(jax.ShapeDtypeStruct((mpad, ncols), jnp.bfloat16),
                   jax.ShapeDtypeStruct((n_tiles * 8, ncols), jnp.float32)),
        grid=(n_tiles,),
        in_specs=[
            pl.BlockSpec((tm, K), lambda i: (i, 0)),
            pl.BlockSpec((K, ncols), lambda i: (0, 0)),
            pl.BlockSpec((1, ncols), lambda i: (0, 0)),
        ],
        out_specs=(pl.BlockSpec((tm, ncols), lambda i: (i, 0)),
                   pl.BlockSpec((8, ncols), lambda i: (i, 0))),
        compiler_params=_cparams(("parallel",)),
    )(xp, wmat, bias)

    # ---- tiny jnp glue: cross-tile + cross-group reduction, BN math ----
    stats = stats.reshape(n_tiles, 8, ncols)
    s1 = jnp.sum(stats[:, 0, :], axis=0)
    s2 = jnp.sum(stats[:, 1, :], axis=0)
    if groups > 1:  # pool the sub-pixel output phases into per-channel stats
        s1 = s1.reshape(groups, cpad).sum(axis=0)
        s2 = s2.reshape(groups, cpad).sum(axis=0)
    count = float(M * groups)
    mean = s1 / count
    var = s2 / count - mean * mean                # biased (torch training mode)
    inv = jax.lax.rsqrt(var + eps)
    scale = gamma_c * inv
    shift = beta_c - mean * scale
    if groups > 1:
        scale = jnp.tile(scale, groups)
        shift = jnp.tile(shift, groups)
    scale = scale.reshape(1, ncols)
    shift = shift.reshape(1, ncols)

    # ---- pass 2: normalize ----
    out = pl.pallas_call(
        _scale_shift_kernel,
        out_shape=jax.ShapeDtypeStruct((mpad, ncols), jnp.bfloat16),
        grid=(n_tiles,),
        in_specs=[
            pl.BlockSpec((tm, ncols), lambda i: (i, 0)),
            pl.BlockSpec((1, ncols), lambda i: (0, 0)),
            pl.BlockSpec((1, ncols), lambda i: (0, 0)),
        ],
        out_specs=pl.BlockSpec((tm, ncols), lambda i: (i, 0)),
        compiler_params=_cparams(("parallel",)),
    )(y, scale, shift)
    return out[:M]


def heads_reparam_decfc(p, h_flat, eps):
    """Fused [mu | logvar | pose] heads + reparametrisation + decoder FC."""
    N = h_flat.shape[0]
    flat, flatp = p["flat"], p["flatp"]
    L, P = p["latent_dims"], p["pose_dims"]
    hb = h_flat.astype(jnp.bfloat16)
    if flatp != flat:
        hb = jnp.pad(hb, ((0, 0), (0, flatp - flat)))
    eps_p = jnp.pad(eps.astype(jnp.float32), ((0, 0), (0, _HB - L)))
    lat, g = pl.pallas_call(
        _heads_kernel,
        out_shape=(jax.ShapeDtypeStruct((N, 4 * _HB), jnp.float32),
                   jax.ShapeDtypeStruct((N, flatp), jnp.bfloat16)),
        grid=(1,),
        in_specs=[
            pl.BlockSpec((N, flatp), lambda i: (0, 0)),
            pl.BlockSpec((flatp, 3 * _HB), lambda i: (0, 0)),
            pl.BlockSpec((1, 3 * _HB), lambda i: (0, 0)),
            pl.BlockSpec((N, _HB), lambda i: (0, 0)),
            pl.BlockSpec((2 * _HB, flatp), lambda i: (0, 0)),
            pl.BlockSpec((1, flatp), lambda i: (0, 0)),
        ],
        out_specs=(pl.BlockSpec((N, 4 * _HB), lambda i: (0, 0)),
                   pl.BlockSpec((N, flatp), lambda i: (0, 0))),
        compiler_params=_cparams(("arbitrary",)),
    )(hb, p["whead"], p["bhead"], eps_p, p["wdec"], p["bdec"])
    mu = lat[:, :L]
    logvar = lat[:, _HB:_HB + L]
    pose = lat[:, 2 * _HB:2 * _HB + P] if P else None
    latent = lat[:, 3 * _HB:3 * _HB + L]
    return mu, logvar, pose, latent, g[:, :flat]


# ---------------------------------------------------------------------------
# Conv / ConvTranspose lowering (NHWC bf16, im2col glue + fused Pallas GEMMs)
# ---------------------------------------------------------------------------

def _im2col_nhwc(x, k, stride, padding):
    """NHWC -> (N*Ho*Wo, k*k*C); columns ordered (kh, kw, c).  Layout glue only."""
    N, H, W, C = x.shape
    xp = jnp.pad(x, ((0, 0), (padding, padding), (padding, padding), (0, 0)))
    Ho = (H + 2 * padding - k) // stride + 1
    Wo = (W + 2 * padding - k) // stride + 1
    cols = []
    for i in range(k):
        for j in range(k):
            cols.append(xp[:, i:i + stride * Ho:stride, j:j + stride * Wo:stride, :])
    pat = jnp.concatenate(cols, axis=-1)                    # (N, Ho, Wo, k*k*C)
    return pat.reshape(N * Ho * Wo, k * k * C), Ho, Wo


def conv2d_bn_relu(x_nhwc, lyr, *, stride=2, padding=1):
    """Conv2d(3, s=2, p=1) -> bias -> ReLU -> BatchNorm2d.  NHWC bf16 in/out."""
    N = x_nhwc.shape[0]
    cols, Ho, Wo = _im2col_nhwc(x_nhwc, 3, stride, padding)
    y = _gemm_relu_bn_twopass(cols, lyr["wmat"], lyr["b"],
                              lyr["gamma"], lyr["beta"], groups=1)
    return y[:, :lyr["cout"]].reshape(N, Ho, Wo, lyr["cout"])


def _interleave_phases(y, N, H, W, cpad, Cout):
    """(N*H*W, 4*cpad) with columns (r, s, c) -> NHWC (N, 2H, 2W, Cout)."""
    y = y.reshape(N, H, W, 2, 2, cpad)[..., :Cout]          # (N,H,W,r,s,C)
    y = jnp.transpose(y, (0, 1, 3, 2, 4, 5))                # (N,H,r,W,s,C)
    return y.reshape(N, 2 * H, 2 * W, Cout)


def tconv2d_bn_relu(x_nhwc, lyr):
    """ConvTranspose2d(4,2,1) -> bias -> ReLU -> BatchNorm2d (sub-pixel GEMM)."""
    N, H, W, _ = x_nhwc.shape
    cols, _, _ = _im2col_nhwc(x_nhwc, 3, 1, 1)
    y = _gemm_relu_bn_twopass(cols, lyr["wmat"], lyr["b4"],
                              lyr["gamma"], lyr["beta"], groups=4)
    return _interleave_phases(y, N, H, W, lyr["cpad"], lyr["cout"])


def tconv2d_sigmoid(x_nhwc, lyr):
    """ConvTranspose2d(4,2,1) -> bias -> sigmoid (final decoder layer)."""
    N, H, W, _ = x_nhwc.shape
    cols, _, _ = _im2col_nhwc(x_nhwc, 3, 1, 1)
    y = gemm_bias_act(cols, lyr["wmat"], lyr["b4"], act="sigmoid",
                      out_dtype=jnp.float32)
    return _interleave_phases(y, N, H, W, lyr["cpad"], lyr["cout"])


# ---------------------------------------------------------------------------
# Parameter init + packing (hoisted out of the jitted forward)
# ---------------------------------------------------------------------------

def _uniform_np(key, shape, fan_in):
    bound = 1.0 / np.sqrt(fan_in)
    return np.asarray(jax.random.uniform(key, shape, jnp.float32, -bound, bound))


def _pack_tconv_weight(w, cpad):
    """ConvTranspose2d(k=4,s=2,p=1) weight (Cin,Cout,4,4) -> sub-pixel GEMM
    matrix.  Rows: (dy,dx,ci) over the shared 3x3 window of the 1-padded
    input; columns: (r,s,co_pad) over the 2x2 output phases.
    out[2q+r, 2p+s, co] = sum_{dy in {r,r+1}, dx in {s,s+1}, ci}
                          x_pad[q+dy, p+dx, ci] * w[ci, co, 3+r-2dy, 3+s-2dx]."""
    Cin, Cout = w.shape[0], w.shape[1]
    wb = np.zeros((3, 3, Cin, 2, 2, cpad), np.float32)
    for r in range(2):
        for s in range(2):
            for dy in (r, r + 1):
                for dx in (s, s + 1):
                    ky, kx = 3 + r - 2 * dy, 3 + s - 2 * dx
                    wb[dy, dx, :, r, s, :Cout] = w[:, :, ky, kx]
    return wb.reshape(9 * Cin, 4 * cpad)


def init_params(key, capacity, depth, input_size, latent_dims, pose_dims):
    c = capacity
    bottom_dim = tuple(int(i / 2 ** depth) for i in input_size)
    chf = 1 if depth == 0 else c * depth
    flat = chf * int(np.prod(bottom_dim))
    flatp = _round_up(flat, 128)
    keys = iter(jax.random.split(key, 64))
    p = {"bottom_dim": bottom_dim, "chf": chf, "depth": depth,
         "latent_dims": latent_dims, "pose_dims": pose_dims,
         "flat": flat, "flatp": flatp}

    # ----- encoder convs: Conv2d(prev, c*(d+1), 3, s=2, p=1) + BatchNorm2d -----
    enc = []
    prev = 1
    for d in range(depth):
        sh = c * (d + 1)
        fan = prev * 9
        w = _uniform_np(next(keys), (sh, prev, 3, 3), fan)
        b = _uniform_np(next(keys), (sh,), fan)
        cpad = _round_up(sh, 128)
        wmat = np.zeros((9 * prev, cpad), np.float32)
        wmat[:, :sh] = np.transpose(w, (2, 3, 1, 0)).reshape(9 * prev, sh)
        bp = np.zeros((1, cpad), np.float32); bp[0, :sh] = b
        gamma = np.zeros((cpad,), np.float32); gamma[:sh] = 1.0
        beta = np.zeros((cpad,), np.float32)
        enc.append(dict(wmat=jnp.asarray(wmat, jnp.bfloat16),
                        b=jnp.asarray(bp), gamma=jnp.asarray(gamma),
                        beta=jnp.asarray(beta), cout=sh))
        prev = sh
    p["enc"] = enc

    # ----- heads (mu / logvar / pose) packed into lane-aligned blocks -----
    whead = np.zeros((flatp, 3 * _HB), np.float32)
    bhead = np.zeros((1, 3 * _HB), np.float32)
    whead[:flat, 0:latent_dims] = _uniform_np(next(keys), (flat, latent_dims), flat)
    bhead[0, 0:latent_dims] = _uniform_np(next(keys), (latent_dims,), flat)
    whead[:flat, _HB:_HB + latent_dims] = _uniform_np(next(keys), (flat, latent_dims), flat)
    bhead[0, _HB:_HB + latent_dims] = _uniform_np(next(keys), (latent_dims,), flat)
    if pose_dims:
        whead[:flat, 2 * _HB:2 * _HB + pose_dims] = _uniform_np(
            next(keys), (flat, pose_dims), flat)
        bhead[0, 2 * _HB:2 * _HB + pose_dims] = _uniform_np(
            next(keys), (pose_dims,), flat)
    p["whead"] = jnp.asarray(whead, jnp.bfloat16)
    p["bhead"] = jnp.asarray(bhead)

    # ----- decoder FC packed for the lane-aligned [latent | pose] z layout -----
    in_f = latent_dims + pose_dims if pose_dims else latent_dims
    dec_fc_w = _uniform_np(next(keys), (in_f, flat), in_f)
    dec_fc_b = _uniform_np(next(keys), (flat,), in_f)
    wdec = np.zeros((2 * _HB, flatp), np.float32)
    bdec = np.zeros((1, flatp), np.float32)
    wdec[0:latent_dims, :flat] = dec_fc_w[0:latent_dims]
    if pose_dims:
        wdec[_HB:_HB + pose_dims, :flat] = dec_fc_w[latent_dims:]
    bdec[0, :flat] = dec_fc_b
    p["wdec"] = jnp.asarray(wdec, jnp.bfloat16)
    p["bdec"] = jnp.asarray(bdec)

    # ----- decoder tconvs: ConvTranspose2d(prev, sh, 4, 2, 1) + BatchNorm2d -----
    dec = []
    prev = c * depth
    for d in range(depth, 0, -1):
        sh = c * (d - 1) if d != 1 else 1
        fan = sh * 16
        w = _uniform_np(next(keys), (prev, sh, 4, 4), fan)
        b = _uniform_np(next(keys), (sh,), fan)
        cpad = _round_up(sh, 32)                 # 4 phases * cpad -> 128-lane dense
        wmat = _pack_tconv_weight(w, cpad)
        bp = np.zeros((cpad,), np.float32); bp[:sh] = b
        b4 = np.tile(bp, 4).reshape(1, 4 * cpad)
        gamma = np.zeros((cpad,), np.float32); gamma[:sh] = 1.0
        beta = np.zeros((cpad,), np.float32)
        dec.append(dict(wmat=jnp.asarray(wmat, jnp.bfloat16),
                        b4=jnp.asarray(b4), gamma=jnp.asarray(gamma),
                        beta=jnp.asarray(beta), cout=sh, cpad=cpad))
        prev = sh
    p["dec"] = dec[:-1]
    p["dec_last"] = dec[-1]
    return p


# ---------------------------------------------------------------------------
# AffinityVAE forward
# ---------------------------------------------------------------------------

def affinity_vae_forward(p, x, eps):
    depth = p["depth"]
    N = x.shape[0]

    # ----- encoder (NHWC bf16 internally) -----
    h = jnp.transpose(x, (0, 2, 3, 1)).astype(jnp.bfloat16)  # NCHW -> NHWC once
    for d in range(depth):
        h = conv2d_bn_relu(h, p["enc"][d])
    # flatten in torch NCHW (c, h, w) order (bottleneck-sized tensor only)
    h_flat = jnp.transpose(h, (0, 3, 1, 2)).reshape(N, -1)

    # ----- fused heads + reparametrisation + decoder FC -----
    mu, logvar, pose, latent, g = heads_reparam_decfc(p, h_flat, eps)

    # ----- decoder -----
    g = g.reshape(N, p["chf"], *p["bottom_dim"])             # torch view order
    g = jnp.transpose(g, (0, 2, 3, 1))                       # -> NHWC (tiny)
    for d in range(depth - 1):
        g = tconv2d_bn_relu(g, p["dec"][d])
    x_recon = tconv2d_sigmoid(g, p["dec_last"])
    x_recon = jnp.transpose(x_recon, (0, 3, 1, 2))           # NHWC -> NCHW once
    return x_recon, mu, logvar, latent, pose


# ---------------------------------------------------------------------------
# Main
# ---------------------------------------------------------------------------

if __name__ == "__main__":
    capacity, depth = 4, 2
    input_size = (16, 16)
    latent_dims, pose_dims = 8, 4
    batch = 2

    key = jax.random.PRNGKey(0)
    k_param, k_x, k_eps = jax.random.split(key, 3)

    params = init_params(k_param, capacity, depth, input_size, latent_dims, pose_dims)
    x = jax.random.normal(k_x, (batch, 1, *input_size), jnp.float32)   # NCHW
    eps = jax.random.normal(k_eps, (batch, latent_dims), jnp.float32)  # deterministic eps

    fwd = jax.jit(lambda xx, ee: affinity_vae_forward(params, xx, ee))
    x_recon, mu, logvar, latent, pose = fwd(x, eps)
    jax.block_until_ready((x_recon, mu, logvar, latent, pose))

    assert x_recon.shape == (batch, 1, *input_size)
    assert mu.shape == (batch, latent_dims)
    assert logvar.shape == (batch, latent_dims)
    assert latent.shape == (batch, latent_dims)
    assert pose.shape == (batch, pose_dims)
    assert bool(jnp.all(jnp.isfinite(x_recon)))
    assert bool(jnp.all((x_recon >= 0) & (x_recon <= 1)))  # sigmoid output

    print("KERNEL_OK")
</pallas_src>

<mosaic_0001>
module attributes {stable_mosaic.version = 11 : i64} {
  func.func @_gemm_relu_stats_kernel(%arg0: i32, %arg1: memref<128x9xbf16, #tpu.memory_space<vmem>>, %arg2: memref<9x128xbf16, #tpu.memory_space<vmem>>, %arg3: memref<1x128xf32, #tpu.memory_space<vmem>>, %arg4: memref<128x128xbf16, #tpu.memory_space<vmem>>, %arg5: memref<8x128xf32, #tpu.memory_space<vmem>>) attributes {dimension_semantics = [#tpu.dimension_semantics<parallel>], iteration_bounds = array<i64: 1>, scalar_prefetch = 0 : i64, scratch_operands = 0 : i64, tpu.core_type = #tpu.core_type<tc>, window_params = [{transform_indices = @transform_0, window_bounds = array<i64: 128, 9>}, {pipeline_mode = #tpu.pipeline_mode<synchronous>, transform_indices = @transform_1, window_bounds = array<i64: 9, 128>}, {pipeline_mode = #tpu.pipeline_mode<synchronous>, transform_indices = @transform_2, window_bounds = array<i64: 1, 128>}, {transform_indices = @transform_3, window_bounds = array<i64: 128, 128>}, {transform_indices = @transform_4, window_bounds = array<i64: 8, 128>}]} {
    %c0 = arith.constant 0 : index
    %c0_0 = arith.constant 0 : index
    %0 = vector.load %arg1[%c0, %c0_0] : memref<128x9xbf16, #tpu.memory_space<vmem>>, vector<128x9xbf16>
    %c0_1 = arith.constant 0 : index
    %c0_2 = arith.constant 0 : index
    %1 = vector.load %arg2[%c0_1, %c0_2] : memref<9x128xbf16, #tpu.memory_space<vmem>>, vector<9x128xbf16>
    %cst = arith.constant dense<0.000000e+00> : vector<128x128xf32>
    %2 = tpu.matmul %0, %1, %cst {dimension_numbers = #tpu.dot_dimension_numbers<[1], [0], [0], [1], [0, 0, 1, 1], [], []>} : vector<128x9xbf16>, vector<9x128xbf16>, vector<128x128xf32> -> vector<128x128xf32>
    %c0_3 = arith.constant 0 : index
    %c0_4 = arith.constant 0 : index
    %3 = vector.load %arg3[%c0_3, %c0_4] : memref<1x128xf32, #tpu.memory_space<vmem>>, vector<1x128xf32>
    %4 = vector.broadcast %3 : vector<1x128xf32> to vector<128x128xf32>
    %5 = arith.addf %2, %4 : vector<128x128xf32>
    %cst_5 = arith.constant 0.000000e+00 : f32
    %6 = vector.broadcast %cst_5 : f32 to vector<128x128xf32>
    %7 = arith.maximumf %5, %6 : vector<128x128xf32>
    %cst_6 = arith.constant dense<0.000000e+00> : vector<128xf32>
    %8 = vector.multi_reduction <add>, %7, %cst_6 [0] : vector<128x128xf32> to vector<128xf32>
    %9 = vector.shape_cast %8 : vector<128xf32> to vector<1x128xf32>
    %10 = arith.mulf %7, %7 : vector<128x128xf32>
    %cst_7 = arith.constant dense<0.000000e+00> : vector<128xf32>
    %11 = vector.multi_reduction <add>, %10, %cst_7 [0] : vector<128x128xf32> to vector<128xf32>
    %12 = vector.shape_cast %11 : vector<128xf32> to vector<1x128xf32>
    %cst_8 = arith.constant 0.000000e+00 : f32
    %13 = vector.broadcast %cst_8 : f32 to vector<6x128xf32>
    %14 = tpu.concatenate %9, %12, %13 in 0 : vector<1x128xf32>, vector<1x128xf32>, vector<6x128xf32> -> vector<8x128xf32>
    %c0_9 = arith.constant 0 : index
    %c0_10 = arith.constant 0 : index
    %15 = vector.load %arg5[%c0_9, %c0_10] : memref<8x128xf32, #tpu.memory_space<vmem>>, vector<8x128xf32>
    tpu.vector_store %arg5[%c0_9, %c0_10], %14 {strides = array<i32>} : memref<8x128xf32, #tpu.memory_space<vmem>>, vector<8x128xf32>,
    %16 = arith.truncf %7 : vector<128x128xf32> to vector<128x128xbf16>
    %c0_11 = arith.constant 0 : index
    %c0_12 = arith.constant 0 : index
    %17 = vector.load %arg4[%c0_11, %c0_12] : memref<128x128xbf16, #tpu.memory_space<vmem>>, vector<128x128xbf16>
    tpu.vector_store %arg4[%c0_11, %c0_12], %16 {strides = array<i32>} : memref<128x128xbf16, #tpu.memory_space<vmem>>, vector<128x128xbf16>,
    return
  }
  func.func @transform_0(%arg0: i32) -> (i32, i32) {
    %c0_i32 = arith.constant 0 : i32
    %c0_i32_0 = arith.constant 0 : i32
    return %arg0, %c0_i32 : i32, i32
  }
  func.func @transform_1(%arg0: i32) -> (i32, i32) {
    %c0_i32 = arith.constant 0 : i32
    %c0_i32_0 = arith.constant 0 : i32
    %c0_i32_1 = arith.constant 0 : i32
    return %c0_i32, %c0_i32_0 : i32, i32
  }
  func.func @transform_2(%arg0: i32) -> (i32, i32) {
    %c0_i32 = arith.constant 0 : i32
    %c0_i32_0 = arith.constant 0 : i32
    %c0_i32_1 = arith.constant 0 : i32
    return %c0_i32, %c0_i32_0 : i32, i32
  }
  func.func @transform_3(%arg0: i32) -> (i32, i32) {
    %c0_i32 = arith.constant 0 : i32
    %c0_i32_0 = arith.constant 0 : i32
    return %arg0, %c0_i32 : i32, i32
  }
  func.func @transform_4(%arg0: i32) -> (i32, i32) {
    %c0_i32 = arith.constant 0 : i32
    %c0_i32_0 = arith.constant 0 : i32
    return %arg0, %c0_i32 : i32, i32
  }
}

module attributes {stable_mosaic.version = 11 : i64} {
  func.func @_scale_shift_kernel(%arg0: i32, %arg1: memref<128x128xbf16, #tpu.memory_space<vmem>>, %arg2: memref<1x128xf32, #tpu.memory_space<vmem>>, %arg3: memref<1x128xf32, #tpu.memory_space<vmem>>, %arg4: memref<128x128xbf16, #tpu.memory_space<vmem>>) attributes {dimension_semantics = [#tpu.dimension_semantics<parallel>], iteration_bounds = array<i64: 1>, scalar_prefetch = 0 : i64, scratch_operands = 0 : i64, tpu.core_type = #tpu.core_type<tc>, window_params = [{transform_indices = @transform_0, window_bounds = array<i64: 128, 128>}, {pipeline_mode = #tpu.pipeline_mode<synchronous>, transform_indices = @transform_1, window_bounds = array<i64: 1, 128>}, {pipeline_mode = #tpu.pipeline_mode<synchronous>, transform_indices = @transform_2, window_bounds = array<i64: 1, 128>}, {transform_indices = @transform_3, window_bounds = array<i64: 128, 128>}]} {
    %c0 = arith.constant 0 : index
    %c0_0 = arith.constant 0 : index
    %0 = vector.load %arg1[%c0, %c0_0] : memref<128x128xbf16, #tpu.memory_space<vmem>>, vector<128x128xbf16>
    %1 = arith.extf %0 : vector<128x128xbf16> to vector<128x128xf32>
    %c0_1 = arith.constant 0 : index
    %c0_2 = arith.constant 0 : index
    %2 = vector.load %arg2[%c0_1, %c0_2] : memref<1x128xf32, #tpu.memory_space<vmem>>, vector<1x128xf32>
    %3 = vector.broadcast %2 : vector<1x128xf32> to vector<128x128xf32>
    %4 = arith.mulf %1, %3 : vector<128x128xf32>
    %c0_3 = arith.constant 0 : index
    %c0_4 = arith.constant 0 : index
    %5 = vector.load %arg3[%c0_3, %c0_4] : memref<1x128xf32, #tpu.memory_space<vmem>>, vector<1x128xf32>
    %6 = vector.broadcast %5 : vector<1x128xf32> to vector<128x128xf32>
    %7 = arith.addf %4, %6 : vector<128x128xf32>
    %8 = arith.truncf %7 : vector<128x128xf32> to vector<128x128xbf16>
    %c0_5 = arith.constant 0 : index
    %c0_6 = arith.constant 0 : index
    %9 = vector.load %arg4[%c0_5, %c0_6] : memref<128x128xbf16, #tpu.memory_space<vmem>>, vector<128x128xbf16>
    tpu.vector_store %arg4[%c0_5, %c0_6], %8 {strides = array<i32>} : memref<128x128xbf16, #tpu.memory_space<vmem>>, vector<128x128xbf16>,
    return
  }
  func.func @transform_0(%arg0: i32) -> (i32, i32) {
    %c0_i32 = arith.constant 0 : i32
    %c0_i32_0 = arith.constant 0 : i32
    return %arg0, %c0_i32 : i32, i32
  }
  func.func @transform_1(%arg0: i32) -> (i32, i32) {
    %c0_i32 = arith.constant 0 : i32
    %c0_i32_0 = arith.constant 0 : i32
    %c0_i32_1 = arith.constant 0 : i32
    return %c0_i32, %c0_i32_0 : i32, i32
  }
  func.func @transform_2(%arg0: i32) -> (i32, i32) {
    %c0_i32 = arith.constant 0 : i32
    %c0_i32_0 = arith.constant 0 : i32
    %c0_i32_1 = arith.constant 0 : i32
    return %c0_i32, %c0_i32_0 : i32, i32
  }
  func.func @transform_3(%arg0: i32) -> (i32, i32) {
    %c0_i32 = arith.constant 0 : i32
    %c0_i32_0 = arith.constant 0 : i32
    return %arg0, %c0_i32 : i32, i32
  }
}

module attributes {stable_mosaic.version = 11 : i64} {
  func.func @_gemm_relu_stats_kernel(%arg0: i32, %arg1: memref<32x36xbf16, #tpu.memory_space<vmem>>, %arg2: memref<36x128xbf16, #tpu.memory_space<vmem>>, %arg3: memref<1x128xf32, #tpu.memory_space<vmem>>, %arg4: memref<32x128xbf16, #tpu.memory_space<vmem>>, %arg5: memref<8x128xf32, #tpu.memory_space<vmem>>) attributes {dimension_semantics = [#tpu.dimension_semantics<parallel>], iteration_bounds = array<i64: 1>, scalar_prefetch = 0 : i64, scratch_operands = 0 : i64, tpu.core_type = #tpu.core_type<tc>, window_params = [{transform_indices = @transform_0, window_bounds = array<i64: 32, 36>}, {pipeline_mode = #tpu.pipeline_mode<synchronous>, transform_indices = @transform_1, window_bounds = array<i64: 36, 128>}, {pipeline_mode = #tpu.pipeline_mode<synchronous>, transform_indices = @transform_2, window_bounds = array<i64: 1, 128>}, {transform_indices = @transform_3, window_bounds = array<i64: 32, 128>}, {transform_indices = @transform_4, window_bounds = array<i64: 8, 128>}]} {
    %c0 = arith.constant 0 : index
    %c0_0 = arith.constant 0 : index
    %0 = vector.load %arg1[%c0, %c0_0] : memref<32x36xbf16, #tpu.memory_space<vmem>>, vector<32x36xbf16>
    %c0_1 = arith.constant 0 : index
    %c0_2 = arith.constant 0 : index
    %1 = vector.load %arg2[%c0_1, %c0_2] : memref<36x128xbf16, #tpu.memory_space<vmem>>, vector<36x128xbf16>
    %cst = arith.constant dense<0.000000e+00> : vector<32x128xf32>
    %2 = tpu.matmul %0, %1, %cst {dimension_numbers = #tpu.dot_dimension_numbers<[1], [0], [0], [1], [0, 0, 1, 1], [], []>} : vector<32x36xbf16>, vector<36x128xbf16>, vector<32x128xf32> -> vector<32x128xf32>
    %c0_3 = arith.constant 0 : index
    %c0_4 = arith.constant 0 : index
    %3 = vector.load %arg3[%c0_3, %c0_4] : memref<1x128xf32, #tpu.memory_space<vmem>>, vector<1x128xf32>
    %4 = vector.broadcast %3 : vector<1x128xf32> to vector<32x128xf32>
    %5 = arith.addf %2, %4 : vector<32x128xf32>
    %cst_5 = arith.constant 0.000000e+00 : f32
    %6 = vector.broadcast %cst_5 : f32 to vector<32x128xf32>
    %7 = arith.maximumf %5, %6 : vector<32x128xf32>
    %cst_6 = arith.constant dense<0.000000e+00> : vector<128xf32>
    %8 = vector.multi_reduction <add>, %7, %cst_6 [0] : vector<32x128xf32> to vector<128xf32>
    %9 = vector.shape_cast %8 : vector<128xf32> to vector<1x128xf32>
    %10 = arith.mulf %7, %7 : vector<32x128xf32>
    %cst_7 = arith.constant dense<0.000000e+00> : vector<128xf32>
    %11 = vector.multi_reduction <add>, %10, %cst_7 [0] : vector<32x128xf32> to vector<128xf32>
    %12 = vector.shape_cast %11 : vector<128xf32> to vector<1x128xf32>
    %cst_8 = arith.constant 0.000000e+00 : f32
    %13 = vector.broadcast %cst_8 : f32 to vector<6x128xf32>
    %14 = tpu.concatenate %9, %12, %13 in 0 : vector<1x128xf32>, vector<1x128xf32>, vector<6x128xf32> -> vector<8x128xf32>
    %c0_9 = arith.constant 0 : index
    %c0_10 = arith.constant 0 : index
    %15 = vector.load %arg5[%c0_9, %c0_10] : memref<8x128xf32, #tpu.memory_space<vmem>>, vector<8x128xf32>
    tpu.vector_store %arg5[%c0_9, %c0_10], %14 {strides = array<i32>} : memref<8x128xf32, #tpu.memory_space<vmem>>, vector<8x128xf32>,
    %16 = arith.truncf %7 : vector<32x128xf32> to vector<32x128xbf16>
    %c0_11 = arith.constant 0 : index
    %c0_12 = arith.constant 0 : index
    %17 = vector.load %arg4[%c0_11, %c0_12] : memref<32x128xbf16, #tpu.memory_space<vmem>>, vector<32x128xbf16>
    tpu.vector_store %arg4[%c0_11, %c0_12], %16 {strides = array<i32>} : memref<32x128xbf16, #tpu.memory_space<vmem>>, vector<32x128xbf16>,
    return
  }
  func.func @transform_0(%arg0: i32) -> (i32, i32) {
    %c0_i32 = arith.constant 0 : i32
    %c0_i32_0 = arith.constant 0 : i32
    return %arg0, %c0_i32 : i32, i32
  }
  func.func @transform_1(%arg0: i32) -> (i32, i32) {
    %c0_i32 = arith.constant 0 : i32
    %c0_i32_0 = arith.constant 0 : i32
    %c0_i32_1 = arith.constant 0 : i32
    return %c0_i32, %c0_i32_0 : i32, i32
  }
  func.func @transform_2(%arg0: i32) -> (i32, i32) {
    %c0_i32 = arith.constant 0 : i32
    %c0_i32_0 = arith.constant 0 : i32
    %c0_i32_1 = arith.constant 0 : i32
    return %c0_i32, %c0_i32_0 : i32, i32
  }
  func.func @transform_3(%arg0: i32) -> (i32, i32) {
    %c0_i32 = arith.constant 0 : i32
    %c0_i32_0 = arith.constant 0 : i32
    return %arg0, %c0_i32 : i32, i32
  }
  func.func @transform_4(%arg0: i32) -> (i32, i32) {
    %c0_i32 = arith.constant 0 : i32
    %c0_i32_0 = arith.constant 0 : i32
    return %arg0, %c0_i32 : i32, i32
  }
}

module attributes {stable_mosaic.version = 11 : i64} {
  func.func @_scale_shift_kernel(%arg0: i32, %arg1: memref<32x128xbf16, #tpu.memory_space<vmem>>, %arg2: memref<1x128xf32, #tpu.memory_space<vmem>>, %arg3: memref<1x128xf32, #tpu.memory_space<vmem>>, %arg4: memref<32x128xbf16, #tpu.memory_space<vmem>>) attributes {dimension_semantics = [#tpu.dimension_semantics<parallel>], iteration_bounds = array<i64: 1>, scalar_prefetch = 0 : i64, scratch_operands = 0 : i64, tpu.core_type = #tpu.core_type<tc>, window_params = [{transform_indices = @transform_0, window_bounds = array<i64: 32, 128>}, {pipeline_mode = #tpu.pipeline_mode<synchronous>, transform_indices = @transform_1, window_bounds = array<i64: 1, 128>}, {pipeline_mode = #tpu.pipeline_mode<synchronous>, transform_indices = @transform_2, window_bounds = array<i64: 1, 128>}, {transform_indices = @transform_3, window_bounds = array<i64: 32, 128>}]} {
    %c0 = arith.constant 0 : index
    %c0_0 = arith.constant 0 : index
    %0 = vector.load %arg1[%c0, %c0_0] : memref<32x128xbf16, #tpu.memory_space<vmem>>, vector<32x128xbf16>
    %1 = arith.extf %0 : vector<32x128xbf16> to vector<32x128xf32>
    %c0_1 = arith.constant 0 : index
    %c0_2 = arith.constant 0 : index
    %2 = vector.load %arg2[%c0_1, %c0_2] : memref<1x128xf32, #tpu.memory_space<vmem>>, vector<1x128xf32>
    %3 = vector.broadcast %2 : vector<1x128xf32> to vector<32x128xf32>
    %4 = arith.mulf %1, %3 : vector<32x128xf32>
    %c0_3 = arith.constant 0 : index
    %c0_4 = arith.constant 0 : index
    %5 = vector.load %arg3[%c0_3, %c0_4] : memref<1x128xf32, #tpu.memory_space<vmem>>, vector<1x128xf32>
    %6 = vector.broadcast %5 : vector<1x128xf32> to vector<32x128xf32>
    %7 = arith.addf %4, %6 : vector<32x128xf32>
    %8 = arith.truncf %7 : vector<32x128xf32> to vector<32x128xbf16>
    %c0_5 = arith.constant 0 : index
    %c0_6 = arith.constant 0 : index
    %9 = vector.load %arg4[%c0_5, %c0_6] : memref<32x128xbf16, #tpu.memory_space<vmem>>, vector<32x128xbf16>
    tpu.vector_store %arg4[%c0_5, %c0_6], %8 {strides = array<i32>} : memref<32x128xbf16, #tpu.memory_space<vmem>>, vector<32x128xbf16>,
    return
  }
  func.func @transform_0(%arg0: i32) -> (i32, i32) {
    %c0_i32 = arith.constant 0 : i32
    %c0_i32_0 = arith.constant 0 : i32
    return %arg0, %c0_i32 : i32, i32
  }
  func.func @transform_1(%arg0: i32) -> (i32, i32) {
    %c0_i32 = arith.constant 0 : i32
    %c0_i32_0 = arith.constant 0 : i32
    %c0_i32_1 = arith.constant 0 : i32
    return %c0_i32, %c0_i32_0 : i32, i32
  }
  func.func @transform_2(%arg0: i32) -> (i32, i32) {
    %c0_i32 = arith.constant 0 : i32
    %c0_i32_0 = arith.constant 0 : i32
    %c0_i32_1 = arith.constant 0 : i32
    return %c0_i32, %c0_i32_0 : i32, i32
  }
  func.func @transform_3(%arg0: i32) -> (i32, i32) {
    %c0_i32 = arith.constant 0 : i32
    %c0_i32_0 = arith.constant 0 : i32
    return %arg0, %c0_i32 : i32, i32
  }
}

module attributes {stable_mosaic.version = 11 : i64} {
  func.func @_heads_kernel(%arg0: i32, %arg1: memref<2x128xbf16, #tpu.memory_space<vmem>>, %arg2: memref<128x384xbf16, #tpu.memory_space<vmem>>, %arg3: memref<1x384xf32, #tpu.memory_space<vmem>>, %arg4: memref<2x128xf32, #tpu.memory_space<vmem>>, %arg5: memref<256x128xbf16, #tpu.memory_space<vmem>>, %arg6: memref<1x128xf32, #tpu.memory_space<vmem>>, %arg7: memref<2x512xf32, #tpu.memory_space<vmem>>, %arg8: memref<2x128xbf16, #tpu.memory_space<vmem>>) attributes {dimension_semantics = [#tpu.dimension_semantics<arbitrary>], iteration_bounds = array<i64: 1>, scalar_prefetch = 0 : i64, scratch_operands = 0 : i64, tpu.core_type = #tpu.core_type<tc>, window_params = [{pipeline_mode = #tpu.pipeline_mode<synchronous>, transform_indices = @transform_0, window_bounds = array<i64: 2, 128>}, {pipeline_mode = #tpu.pipeline_mode<synchronous>, transform_indices = @transform_1, window_bounds = array<i64: 128, 384>}, {pipeline_mode = #tpu.pipeline_mode<synchronous>, transform_indices = @transform_2, window_bounds = array<i64: 1, 384>}, {pipeline_mode = #tpu.pipeline_mode<synchronous>, transform_indices = @transform_3, window_bounds = array<i64: 2, 128>}, {pipeline_mode = #tpu.pipeline_mode<synchronous>, transform_indices = @transform_4, window_bounds = array<i64: 256, 128>}, {pipeline_mode = #tpu.pipeline_mode<synchronous>, transform_indices = @transform_5, window_bounds = array<i64: 1, 128>}, {pipeline_mode = #tpu.pipeline_mode<synchronous>, transform_indices = @transform_6, window_bounds = array<i64: 2, 512>}, {pipeline_mode = #tpu.pipeline_mode<synchronous>, transform_indices = @transform_7, window_bounds = array<i64: 2, 128>}]} {
    %c0 = arith.constant 0 : index
    %c0_0 = arith.constant 0 : index
    %0 = vector.load %arg1[%c0, %c0_0] : memref<2x128xbf16, #tpu.memory_space<vmem>>, vector<2x128xbf16>
    %c0_1 = arith.constant 0 : index
    %c0_2 = arith.constant 0 : index
    %1 = vector.load %arg2[%c0_1, %c0_2] : memref<128x384xbf16, #tpu.memory_space<vmem>>, vector<128x384xbf16>
    %cst = arith.constant dense<0.000000e+00> : vector<2x384xf32>
    %2 = tpu.matmul %0, %1, %cst {dimension_numbers = #tpu.dot_dimension_numbers<[1], [0], [0], [1], [0, 0, 1, 1], [], []>} : vector<2x128xbf16>, vector<128x384xbf16>, vector<2x384xf32> -> vector<2x384xf32>
    %c0_3 = arith.constant 0 : index
    %c0_4 = arith.constant 0 : index
    %3 = vector.load %arg3[%c0_3, %c0_4] : memref<1x384xf32, #tpu.memory_space<vmem>>, vector<1x384xf32>
    %4 = vector.broadcast %3 : vector<1x384xf32> to vector<2x384xf32>
    %5 = arith.addf %2, %4 : vector<2x384xf32>
    %6 = vector.extract_strided_slice %5 {offsets = [0, 0], sizes = [2, 128], strides = [1, 1]} : vector<2x384xf32> to vector<2x128xf32>
    %7 = vector.extract_strided_slice %5 {offsets = [0, 128], sizes = [2, 128], strides = [1, 1]} : vector<2x384xf32> to vector<2x128xf32>
    %8 = vector.extract_strided_slice %5 {offsets = [0, 256], sizes = [2, 128], strides = [1, 1]} : vector<2x384xf32> to vector<2x128xf32>
    %c0_5 = arith.constant 0 : index
    %c0_6 = arith.constant 0 : index
    %9 = vector.load %arg4[%c0_5, %c0_6] : memref<2x128xf32, #tpu.memory_space<vmem>>, vector<2x128xf32>
    %cst_7 = arith.constant 5.000000e-01 : f32
    %10 = vector.broadcast %cst_7 : f32 to vector<2x128xf32>
    %11 = arith.mulf %10, %7 : vector<2x128xf32>
    %12 = math.exp %11 : vector<2x128xf32>
    %13 = arith.mulf %9, %12 : vector<2x128xf32>
    %14 = arith.addf %6, %13 : vector<2x128xf32>
    %15 = tpu.concatenate %5, %14 in 1 : vector<2x384xf32>, vector<2x128xf32> -> vector<2x512xf32>
    %c0_8 = arith.constant 0 : index
    %c0_9 = arith.constant 0 : index
    %16 = vector.load %arg7[%c0_8, %c0_9] : memref<2x512xf32, #tpu.memory_space<vmem>>, vector<2x512xf32>
    tpu.vector_store %arg7[%c0_8, %c0_9], %15 {strides = array<i32>} : memref<2x512xf32, #tpu.memory_space<vmem>>, vector<2x512xf32>,
    %17 = tpu.concatenate %14, %8 in 1 : vector<2x128xf32>, vector<2x128xf32> -> vector<2x256xf32>
    %18 = arith.truncf %17 : vector<2x256xf32> to vector<2x256xbf16>
    %c0_10 = arith.constant 0 : index
    %c0_11 = arith.constant 0 : index
    %19 = vector.load %arg5[%c0_10, %c0_11] : memref<256x128xbf16, #tpu.memory_space<vmem>>, vector<256x128xbf16>
    %cst_12 = arith.constant dense<0.000000e+00> : vector<2x128xf32>
    %20 = tpu.matmul %18, %19, %cst_12 {dimension_numbers = #tpu.dot_dimension_numbers<[1], [0], [0], [1], [0, 0, 1, 1], [], []>} : vector<2x256xbf16>, vector<256x128xbf16>, vector<2x128xf32> -> vector<2x128xf32>
    %c0_13 = arith.constant 0 : index
    %c0_14 = arith.constant 0 : index
    %21 = vector.load %arg6[%c0_13, %c0_14] : memref<1x128xf32, #tpu.memory_space<vmem>>, vector<1x128xf32>
    %22 = vector.broadcast %21 : vector<1x128xf32> to vector<2x128xf32>
    %23 = arith.addf %20, %22 : vector<2x128xf32>
    %24 = arith.truncf %23 : vector<2x128xf32> to vector<2x128xbf16>
    %c0_15 = arith.constant 0 : index
    %c0_16 = arith.constant 0 : index
    %25 = vector.load %arg8[%c0_15, %c0_16] : memref<2x128xbf16, #tpu.memory_space<vmem>>, vector<2x128xbf16>
    tpu.vector_store %arg8[%c0_15, %c0_16], %24 {strides = array<i32>} : memref<2x128xbf16, #tpu.memory_space<vmem>>, vector<2x128xbf16>,
    return
  }
  func.func @transform_0(%arg0: i32) -> (i32, i32) {
    %c0_i32 = arith.constant 0 : i32
    %c0_i32_0 = arith.constant 0 : i32
    %c0_i32_1 = arith.constant 0 : i32
    return %c0_i32, %c0_i32_0 : i32, i32
  }
  func.func @transform_1(%arg0: i32) -> (i32, i32) {
    %c0_i32 = arith.constant 0 : i32
    %c0_i32_0 = arith.constant 0 : i32
    %c0_i32_1 = arith.constant 0 : i32
    return %c0_i32, %c0_i32_0 : i32, i32
  }
  func.func @transform_2(%arg0: i32) -> (i32, i32) {
    %c0_i32 = arith.constant 0 : i32
    %c0_i32_0 = arith.constant 0 : i32
    %c0_i32_1 = arith.constant 0 : i32
    return %c0_i32, %c0_i32_0 : i32, i32
  }
  func.func @transform_3(%arg0: i32) -> (i32, i32) {
    %c0_i32 = arith.constant 0 : i32
    %c0_i32_0 = arith.constant 0 : i32
    %c0_i32_1 = arith.constant 0 : i32
    return %c0_i32, %c0_i32_0 : i32, i32
  }
  func.func @transform_4(%arg0: i32) -> (i32, i32) {
    %c0_i32 = arith.constant 0 : i32
    %c0_i32_0 = arith.constant 0 : i32
    %c0_i32_1 = arith.constant 0 : i32
    return %c0_i32, %c0_i32_0 : i32, i32
  }
  func.func @transform_5(%arg0: i32) -> (i32, i32) {
    %c0_i32 = arith.constant 0 : i32
    %c0_i32_0 = arith.constant 0 : i32
    %c0_i32_1 = arith.constant 0 : i32
    return %c0_i32, %c0_i32_0 : i32, i32
  }
  func.func @transform_6(%arg0: i32) -> (i32, i32) {
    %c0_i32 = arith.constant 0 : i32
    %c0_i32_0 = arith.constant 0 : i32
    %c0_i32_1 = arith.constant 0 : i32
    return %c0_i32, %c0_i32_0 : i32, i32
  }
  func.func @transform_7(%arg0: i32) -> (i32, i32) {
    %c0_i32 = arith.constant 0 : i32
    %c0_i32_0 = arith.constant 0 : i32
    %c0_i32_1 = arith.constant 0 : i32
    return %c0_i32, %c0_i32_0 : i32, i32
  }
}

module attributes {stable_mosaic.version = 11 : i64} {
  func.func @_gemm_relu_stats_kernel(%arg0: i32, %arg1: memref<32x72xbf16, #tpu.memory_space<vmem>>, %arg2: memref<72x128xbf16, #tpu.memory_space<vmem>>, %arg3: memref<1x128xf32, #tpu.memory_space<vmem>>, %arg4: memref<32x128xbf16, #tpu.memory_space<vmem>>, %arg5: memref<8x128xf32, #tpu.memory_space<vmem>>) attributes {dimension_semantics = [#tpu.dimension_semantics<parallel>], iteration_bounds = array<i64: 1>, scalar_prefetch = 0 : i64, scratch_operands = 0 : i64, tpu.core_type = #tpu.core_type<tc>, window_params = [{transform_indices = @transform_0, window_bounds = array<i64: 32, 72>}, {pipeline_mode = #tpu.pipeline_mode<synchronous>, transform_indices = @transform_1, window_bounds = array<i64: 72, 128>}, {pipeline_mode = #tpu.pipeline_mode<synchronous>, transform_indices = @transform_2, window_bounds = array<i64: 1, 128>}, {transform_indices = @transform_3, window_bounds = array<i64: 32, 128>}, {transform_indices = @transform_4, window_bounds = array<i64: 8, 128>}]} {
    %c0 = arith.constant 0 : index
    %c0_0 = arith.constant 0 : index
    %0 = vector.load %arg1[%c0, %c0_0] : memref<32x72xbf16, #tpu.memory_space<vmem>>, vector<32x72xbf16>
    %c0_1 = arith.constant 0 : index
    %c0_2 = arith.constant 0 : index
    %1 = vector.load %arg2[%c0_1, %c0_2] : memref<72x128xbf16, #tpu.memory_space<vmem>>, vector<72x128xbf16>
    %cst = arith.constant dense<0.000000e+00> : vector<32x128xf32>
    %2 = tpu.matmul %0, %1, %cst {dimension_numbers = #tpu.dot_dimension_numbers<[1], [0], [0], [1], [0, 0, 1, 1], [], []>} : vector<32x72xbf16>, vector<72x128xbf16>, vector<32x128xf32> -> vector<32x128xf32>
    %c0_3 = arith.constant 0 : index
    %c0_4 = arith.constant 0 : index
    %3 = vector.load %arg3[%c0_3, %c0_4] : memref<1x128xf32, #tpu.memory_space<vmem>>, vector<1x128xf32>
    %4 = vector.broadcast %3 : vector<1x128xf32> to vector<32x128xf32>
    %5 = arith.addf %2, %4 : vector<32x128xf32>
    %cst_5 = arith.constant 0.000000e+00 : f32
    %6 = vector.broadcast %cst_5 : f32 to vector<32x128xf32>
    %7 = arith.maximumf %5, %6 : vector<32x128xf32>
    %cst_6 = arith.constant dense<0.000000e+00> : vector<128xf32>
    %8 = vector.multi_reduction <add>, %7, %cst_6 [0] : vector<32x128xf32> to vector<128xf32>
    %9 = vector.shape_cast %8 : vector<128xf32> to vector<1x128xf32>
    %10 = arith.mulf %7, %7 : vector<32x128xf32>
    %cst_7 = arith.constant dense<0.000000e+00> : vector<128xf32>
    %11 = vector.multi_reduction <add>, %10, %cst_7 [0] : vector<32x128xf32> to vector<128xf32>
    %12 = vector.shape_cast %11 : vector<128xf32> to vector<1x128xf32>
    %cst_8 = arith.constant 0.000000e+00 : f32
    %13 = vector.broadcast %cst_8 : f32 to vector<6x128xf32>
    %14 = tpu.concatenate %9, %12, %13 in 0 : vector<1x128xf32>, vector<1x128xf32>, vector<6x128xf32> -> vector<8x128xf32>
    %c0_9 = arith.constant 0 : index
    %c0_10 = arith.constant 0 : index
    %15 = vector.load %arg5[%c0_9, %c0_10] : memref<8x128xf32, #tpu.memory_space<vmem>>, vector<8x128xf32>
    tpu.vector_store %arg5[%c0_9, %c0_10], %14 {strides = array<i32>} : memref<8x128xf32, #tpu.memory_space<vmem>>, vector<8x128xf32>,
    %16 = arith.truncf %7 : vector<32x128xf32> to vector<32x128xbf16>
    %c0_11 = arith.constant 0 : index
    %c0_12 = arith.constant 0 : index
    %17 = vector.load %arg4[%c0_11, %c0_12] : memref<32x128xbf16, #tpu.memory_space<vmem>>, vector<32x128xbf16>
    tpu.vector_store %arg4[%c0_11, %c0_12], %16 {strides = array<i32>} : memref<32x128xbf16, #tpu.memory_space<vmem>>, vector<32x128xbf16>,
    return
  }
  func.func @transform_0(%arg0: i32) -> (i32, i32) {
    %c0_i32 = arith.constant 0 : i32
    %c0_i32_0 = arith.constant 0 : i32
    return %arg0, %c0_i32 : i32, i32
  }
  func.func @transform_1(%arg0: i32) -> (i32, i32) {
    %c0_i32 = arith.constant 0 : i32
    %c0_i32_0 = arith.constant 0 : i32
    %c0_i32_1 = arith.constant 0 : i32
    return %c0_i32, %c0_i32_0 : i32, i32
  }
  func.func @transform_2(%arg0: i32) -> (i32, i32) {
    %c0_i32 = arith.constant 0 : i32
    %c0_i32_0 = arith.constant 0 : i32
    %c0_i32_1 = arith.constant 0 : i32
    return %c0_i32, %c0_i32_0 : i32, i32
  }
  func.func @transform_3(%arg0: i32) -> (i32, i32) {
    %c0_i32 = arith.constant 0 : i32
    %c0_i32_0 = arith.constant 0 : i32
    return %arg0, %c0_i32 : i32, i32
  }
  func.func @transform_4(%arg0: i32) -> (i32, i32) {
    %c0_i32 = arith.constant 0 : i32
    %c0_i32_0 = arith.constant 0 : i32
    return %arg0, %c0_i32 : i32, i32
  }
}

module attributes {stable_mosaic.version = 11 : i64} {
  func.func @_gemm_bias_act_kernel(%arg0: i32, %arg1: memref<128x36xbf16, #tpu.memory_space<vmem>>, %arg2: memref<36x128xbf16, #tpu.memory_space<vmem>>, %arg3: memref<1x128xf32, #tpu.memory_space<vmem>>, %arg4: memref<128x128xf32, #tpu.memory_space<vmem>>) attributes {dimension_semantics = [#tpu.dimension_semantics<parallel>], iteration_bounds = array<i64: 1>, scalar_prefetch = 0 : i64, scratch_operands = 0 : i64, tpu.core_type = #tpu.core_type<tc>, window_params = [{transform_indices = @transform_0, window_bounds = array<i64: 128, 36>}, {pipeline_mode = #tpu.pipeline_mode<synchronous>, transform_indices = @transform_1, window_bounds = array<i64: 36, 128>}, {pipeline_mode = #tpu.pipeline_mode<synchronous>, transform_indices = @transform_2, window_bounds = array<i64: 1, 128>}, {transform_indices = @transform_3, window_bounds = array<i64: 128, 128>}]} {
    %c0 = arith.constant 0 : index
    %c0_0 = arith.constant 0 : index
    %0 = vector.load %arg1[%c0, %c0_0] : memref<128x36xbf16, #tpu.memory_space<vmem>>, vector<128x36xbf16>
    %c0_1 = arith.constant 0 : index
    %c0_2 = arith.constant 0 : index
    %1 = vector.load %arg2[%c0_1, %c0_2] : memref<36x128xbf16, #tpu.memory_space<vmem>>, vector<36x128xbf16>
    %cst = arith.constant dense<0.000000e+00> : vector<128x128xf32>
    %2 = tpu.matmul %0, %1, %cst {dimension_numbers = #tpu.dot_dimension_numbers<[1], [0], [0], [1], [0, 0, 1, 1], [], []>} : vector<128x36xbf16>, vector<36x128xbf16>, vector<128x128xf32> -> vector<128x128xf32>
    %c0_3 = arith.constant 0 : index
    %c0_4 = arith.constant 0 : index
    %3 = vector.load %arg3[%c0_3, %c0_4] : memref<1x128xf32, #tpu.memory_space<vmem>>, vector<1x128xf32>
    %4 = vector.broadcast %3 : vector<1x128xf32> to vector<128x128xf32>
    %5 = arith.addf %2, %4 : vector<128x128xf32>
    %cst_5 = arith.constant 5.000000e-01 : f32
    %6 = vector.broadcast %cst_5 : f32 to vector<128x128xf32>
    %7 = arith.mulf %6, %5 : vector<128x128xf32>
    %8 = math.tanh %7 : vector<128x128xf32>
    %cst_6 = arith.constant 5.000000e-01 : f32
    %9 = vector.broadcast %cst_6 : f32 to vector<128x128xf32>
    %10 = arith.mulf %9, %8 : vector<128x128xf32>
    %cst_7 = arith.constant 5.000000e-01 : f32
    %11 = vector.broadcast %cst_7 : f32 to vector<128x128xf32>
    %12 = arith.addf %10, %11 : vector<128x128xf32>
    %cst_8 = arith.constant 0.000000e+00 : f32
    %cst_9 = arith.constant 1.000000e+00 : f32
    %13 = vector.broadcast %cst_8 : f32 to vector<128x128xf32>
    %14 = arith.maximumf %13, %12 : vector<128x128xf32>
    %15 = vector.broadcast %cst_9 : f32 to vector<128x128xf32>
    %16 = arith.minimumf %15, %14 : vector<128x128xf32>
    %c0_10 = arith.constant 0 : index
    %c0_11 = arith.constant 0 : index
    %17 = vector.load %arg4[%c0_10, %c0_11] : memref<128x128xf32, #tpu.memory_space<vmem>>, vector<128x128xf32>
    tpu.vector_store %arg4[%c0_10, %c0_11], %16 {strides = array<i32>} : memref<128x128xf32, #tpu.memory_space<vmem>>, vector<128x128xf32>,
    return
  }
  func.func @transform_0(%arg0: i32) -> (i32, i32) {
    %c0_i32 = arith.constant 0 : i32
    %c0_i32_0 = arith.constant 0 : i32
    return %arg0, %c0_i32 : i32, i32
  }
  func.func @transform_1(%arg0: i32) -> (i32, i32) {
    %c0_i32 = arith.constant 0 : i32
    %c0_i32_0 = arith.constant 0 : i32
    %c0_i32_1 = arith.constant 0 : i32
    return %c0_i32, %c0_i32_0 : i32, i32
  }
  func.func @transform_2(%arg0: i32) -> (i32, i32) {
    %c0_i32 = arith.constant 0 : i32
    %c0_i32_0 = arith.constant 0 : i32
    %c0_i32_1 = arith.constant 0 : i32
    return %c0_i32, %c0_i32_0 : i32, i32
  }
  func.func @transform_3(%arg0: i32) -> (i32, i32) {
    %c0_i32 = arith.constant 0 : i32
    %c0_i32_0 = arith.constant 0 : i32
    return %arg0, %c0_i32 : i32, i32
  }
}

</mosaic_0001>

<bundles_post_ra>
// kernel: _lambda_.9
= control target key start
LH: loop header
LB: loop body
LE: loop exit
PB: predicated region body
PF: predicated region fallthrough
CT: control target
= control target key end

     0   :  { %s320_s0 = inlined_call_operand.vmem [shape: bf16[128,128], index: 0, kind: input, shape index: {}]   ;;  %s321_s1 = inlined_call_operand.vmem [shape: f32[1,128], index: 1, kind: input, shape index: {}]   ;;  %s322_s2 = inlined_call_operand.vmem [shape: f32[1,128], index: 2, kind: input, shape index: {}]   ;;  %s323_s3 = inlined_call_operand.vmem [shape: bf16[128,128], index: 3, kind: output, shape index: {}]  }
   0x1   :  { %v123_v0 = vld [vmem:[%s320_s0] sm:$0xff]   ;;  %v194_v5 = vld [vmem:[%s320_s0 + $0x8] sm:$0xff]   ;;  %v195_v8 = vld [vmem:[%s320_s0 + $0x10] sm:$0xff]  }
   0x2   :  { %v236_v1 = vld [vmem:[%s321_s1] ss:$0 sm:$0xff]  ;;  %v124_v2 = vunpack.c.l.bf16 %v123_v0  ;;  %v125_v3 = vunpack.c.h.bf16 %v123_v0  ;;  %v128_v6 = vunpack.c.l.bf16 %v194_v5  ;;  %v129_v7 = vunpack.c.h.bf16 %v194_v5  ;;  %v196_v9 = vld [vmem:[%s320_s0 + $0x18] sm:$0xff]   ;;  %v198_v27 = vld [vmem:[%s320_s0 + $0x28] sm:$0xff]  }
   0x3   :  { %v241_v4 = vld [vmem:[%s322_s2] ss:$0 sm:$0xff]  ;;  %v132_v12 = vunpack.c.l.bf16 %v195_v8  ;;  %v133_v13 = vunpack.c.h.bf16 %v195_v8  ;;  %v136_v16 = vunpack.c.l.bf16 %v196_v9  ;;  %v137_v17 = vunpack.c.h.bf16 %v196_v9  ;;  %v199_v32 = vld [vmem:[%s320_s0 + $0x30] sm:$0xff]   ;;  %v200_v37 = vld [vmem:[%s320_s0 + $0x38] sm:$0xff]  }
   0x4   :  { %v50_v10 = vmul.f32 %v236_v1, %v124_v2  ;;  %v51_v11 = vmul.f32 %v236_v1, %v125_v3  ;;  %v52_v14 = vmul.f32 %v236_v1, %v128_v6  ;;  %v53_v15 = vmul.f32 %v236_v1, %v129_v7  ;;  %v197_v18 = vld [vmem:[%s320_s0 + $0x20] sm:$0xff]  }
   0x5   :  { %v54_v21 = vmul.f32 %v236_v1, %v132_v12  ;;  %v55_v22 = vmul.f32 %v236_v1, %v133_v13  ;;  %v56_v25 = vmul.f32 %v236_v1, %v136_v16  ;;  %v57_v26 = vmul.f32 %v236_v1, %v137_v17 }
   0x6   :  { %v70_v19 = vadd.f32 %v241_v4, %v50_v10  ;;  %v71_v20 = vadd.f32 %v241_v4, %v51_v11  ;;  %v72_v23 = vadd.f32 %v241_v4, %v52_v14  ;;  %v73_v24 = vadd.f32 %v241_v4, %v53_v15 }
   0x7   :  { %v74_v29 = vadd.f32 %v241_v4, %v54_v21  ;;  %v75_v30 = vadd.f32 %v241_v4, %v55_v22  ;;  %v140_v31 = vunpack.c.l.bf16 %v197_v18  ;;  %v76_v34 = vadd.f32 %v241_v4, %v56_v25 }
   0x8   :  { %v157_v28 = vpack.c.bf16 %v71_v20, %v70_v19  ;;  %v162_v33 = vpack.c.bf16 %v73_v24, %v72_v23  ;;  %v77_v35 = vadd.f32 %v241_v4, %v57_v26  ;;  %v141_v36 = vunpack.c.h.bf16 %v197_v18 }
   0x9   :  { %v167_v38 = vpack.c.bf16 %v75_v30, %v74_v29  ;;  %v58_v39 = vmul.f32 %v236_v1, %v140_v31  ;;  %v144_v40 = vunpack.c.l.bf16 %v198_v27  ;;  %v145_v41 = vunpack.c.h.bf16 %v198_v27 }
   0xa   :  { %158 = vst [vmem:[%s323_s3] sm:$0xff] %v157_v28   ;;  %v172_v42 = vpack.c.bf16 %v77_v35, %v76_v34  ;;  %v59_v43 = vmul.f32 %v236_v1, %v141_v36  ;;  %v148_v44 = vunpack.c.l.bf16 %v199_v32  ;;  %v149_v45 = vunpack.c.h.bf16 %v199_v32 }
   0xb   :  { %201 = vst [vmem:[%s323_s3 + $0x8] sm:$0xff] %v162_v33   ;;  %v78_v46 = vadd.f32 %v241_v4, %v58_v39  ;;  %v60_v47 = vmul.f32 %v236_v1, %v144_v40  ;;  %v61_v48 = vmul.f32 %v236_v1, %v145_v41  ;;  %v152_v49 = vunpack.c.l.bf16 %v200_v37 }
   0xc   :  { %202 = vst [vmem:[%s323_s3 + $0x10] sm:$0xff] %v167_v38   ;;  %v79_v50 = vadd.f32 %v241_v4, %v59_v43  ;;  %v62_v51 = vmul.f32 %v236_v1, %v148_v44  ;;  %v63_v52 = vmul.f32 %v236_v1, %v149_v45  ;;  %v153_v53 = vunpack.c.h.bf16 %v200_v37 }
   0xd   :  { %203 = vst [vmem:[%s323_s3 + $0x18] sm:$0xff] %v172_v42   ;;  %v80_v54 = vadd.f32 %v241_v4, %v60_v47  ;;  %v81_v55 = vadd.f32 %v241_v4, %v61_v48  ;;  %v64_v56 = vmul.f32 %v236_v1, %v152_v49 }
   0xe   :  { %v177_v57 = vpack.c.bf16 %v79_v50, %v78_v46  ;;  %v82_v58 = vadd.f32 %v241_v4, %v62_v51  ;;  %v83_v59 = vadd.f32 %v241_v4, %v63_v52  ;;  %v65_v60 = vmul.f32 %v236_v1, %v153_v53 }
   0xf   :  { %v182_v61 = vpack.c.bf16 %v81_v55, %v80_v54  ;;  %v84_v62 = vadd.f32 %v241_v4, %v64_v56 }
  0x10   :  { %204 = vst [vmem:[%s323_s3 + $0x20] sm:$0xff] %v177_v57   ;;  %v187_v63 = vpack.c.bf16 %v83_v59, %v82_v58  ;;  %v85_v0 = vadd.f32 %v241_v4, %v65_v60 }
  0x11   :  { %205 = vst [vmem:[%s323_s3 + $0x28] sm:$0xff] %v182_v61  }
  0x12   :  { %206 = vst [vmem:[%s323_s3 + $0x30] sm:$0xff] %v187_v63   ;;  %v192_v2 = vpack.c.bf16 %v85_v0, %v84_v62 }
  0x14   :  { %207 = vst [vmem:[%s323_s3 + $0x38] sm:$0xff] %v192_v2  }

// kernel: _lambda_.8
= control target key start
LH: loop header
LB: loop body
LE: loop exit
PB: predicated region body
PF: predicated region fallthrough
CT: control target
= control target key end

     0   :  { %vm109_vm0 = vcmask 1043456   ;;  %vm110_vm1 = vcmask 1044480   ;;  %v389_v2 = vmov 65535   ;;  %vm84_vm2 = vcmask 72704   ;;  %s519_s1 = inlined_call_operand.vmem [shape: bf16[9,128], index: 1, kind: input, shape index: {}]   ;;  %s520_s0 = inlined_call_operand.vmem [shape: bf16[128,9], index: 0, kind: input, shape index: {}]   ;;  %s521_s2 = inlined_call_operand.vmem [shape: f32[1,128], index: 2, kind: input, shape index: {}]   ;;  %s522_s3 = inlined_call_operand.vmem [shape: bf16[128,128], index: 3, kind: output, shape index: {0}]   ;;  %s523_s4 = inlined_call_operand.vmem [shape: f32[8,128], index: 4, kind: output, shape index: {1}]  }
   0x1   :  { %v318_v0 = vld [vmem:[%s519_s1] sm:$0xf]  ;;  %v336_v1 = vld [vmem:[%s519_s1] sm:$0x10]  ;;  %v111_v3 = vsel %vm109_vm0, 4294967295, %v389_v2  ;;  %v330_v8 = vld [vmem:[%s520_s0 + $0x10] sm:$0xff] }
   0x2   :  { %v319_v4 = vor.u32 %v336_v1, %v318_v0  ;;  %v112_v5 = vsel %vm110_vm1, %v111_v3, 0  ;;  %v328_v7 = vld [vmem:[%s520_s0] sm:$0xff]  ;;  %v334_v10 = vld [vmem:[%s520_s0 + $0x30] sm:$0xff]  ;;  %v329_v11 = vld [vmem:[%s520_s0 + $0x8] sm:$0xff]  ;;  %vm239_vm3 = vcmask 1040384   ;;  %vm241_vm4 = vcmask 1041408  }
   0x3   :  { %v332_v9 = vld [vmem:[%s520_s0 + $0x20] sm:$0xff]  ;;  %v331_v12 = vld [vmem:[%s520_s0 + $0x18] sm:$0xff]  ;;  %v333_v13 = vld [vmem:[%s520_s0 + $0x28] sm:$0xff] }
   0x4   :  { %v114_v6 = vand.u32 %v319_v4, %v112_v5  ;;  %v335_v14 = vld [vmem:[%s520_s0 + $0x38] sm:$0xff]  ;;  %v456_v17 = vld [vmem:[%s521_s2] ss:$0 sm:$0xff] }
   0x6   :  { %123 = vmatpush.bf16.msra.mxu0 %v114_v6  ;;  %384 = vmatpush.bf16.msra.mxu1 %v114_v6 }
   0x7   :  { %385 = vmatpush.bf16.msra.mxu2 %v114_v6  ;;  %386 = vmatpush.bf16.msra.mxu3 %v114_v6 }
   0x9   :  { %320 = vmatmul.msk.bf16.vlgmr.msra.gmra.mxu0 %vm84_vm2, %v328_v7  ;;  %322 = vmatmul.msk.bf16.vlgmr.msra.gmra.mxu1 %vm84_vm2, %v330_v8 }
   0xa   :  { %324 = vmatmul.msk.bf16.vlgmr.msra.gmra.mxu2 %vm84_vm2, %v332_v9  ;;  %326 = vmatmul.msk.bf16.vlgmr.msra.gmra.mxu3 %vm84_vm2, %v334_v10 }
  0x19   :  { %321 = vmatmul.msk.bf16.gmra.mxu0 %vm84_vm2, %v329_v11  ;;  %323 = vmatmul.msk.bf16.gmra.mxu1 %vm84_vm2, %v331_v12 }
  0x1a   :  { %325 = vmatmul.msk.bf16.gmra.mxu2 %vm84_vm2, %v333_v13  ;;  %327 = vmatmul.msk.bf16.gmra.mxu3 %vm84_vm2, %v335_v14 }
  0x86   :  { %v125_v15 = vpop.f32.mrf.mxu0  ;;  %v135_v16 = vpop.f32.mrf.mxu1 }
  0x87   :  { %v136_v18 = vadd.f32 %v456_v17, %v135_v16  ;;  %v126_v19 = vadd.f32 %v456_v17, %v125_v15 }
  0x89   :  { %v169_v26 = vmax.f32 %v136_v18, 0.0  ;;  %v165_v27 = vmax.f32 %v126_v19, 0.0 }
  0x8b   :  { %v202_v52 = vmul.f32 %v165_v27, %v165_v27  ;;  %v206_v7 = vmul.f32 %v169_v26, %v169_v26 }
  0x8d   :  { %v145_v20 = vpop.f32.mrf.mxu2  ;;  %v155_v21 = vpop.f32.mrf.mxu3 }
  0x8e   :  { %v127_v22 = vpop.f32.mrf.mxu0  ;;  %v137_v23 = vpop.f32.mrf.mxu1  ;;  %v146_v30 = vadd.f32 %v456_v17, %v145_v20  ;;  %v156_v31 = vadd.f32 %v456_v17, %v155_v21 }
  0x8f   :  { %v128_v24 = vadd.f32 %v456_v17, %v127_v22  ;;  %v138_v25 = vadd.f32 %v456_v17, %v137_v23 }
  0x90   :  { %v470_v36 = vmax.f32 %v146_v30, 0.0  ;;  %v473_v40 = vmax.f32 %v156_v31, 0.0 }
  0x91   :  { %v166_v28 = vmax.f32 %v128_v24, 0.0  ;;  %v170_v29 = vmax.f32 %v138_v25, 0.0 }
  0x93   :  { %v340_v32 = vpack.c.bf16 %v166_v28, %v165_v27  ;;  %v350_v33 = vpack.c.bf16 %v170_v29, %v169_v26  ;;  %v203_v49 = vmul.f32 %v166_v28, %v166_v28  ;;  %v181_v55 = vadd.f32 %v166_v28, %v165_v27 }
  0x94   :  { %v207_v16 = vmul.f32 %v170_v29, %v170_v29 }
  0x95   :  { %341 = vst [vmem:[%s522_s3] sm:$0xff] %v340_v32   ;;  %v147_v34 = vpop.f32.mrf.mxu2  ;;  %v157_v35 = vpop.f32.mrf.mxu3  ;;  %v218_v60 = vadd.f32 %v203_v49, %v202_v52 }
  0x96   :  { %378 = vst [vmem:[%s522_s3 + $0x10] sm:$0xff] %v350_v33   ;;  %v130_v37 = vpop.f32.mrf.mxu0  ;;  %v140_v38 = vpop.f32.mrf.mxu1  ;;  %v148_v39 = vadd.f32 %v456_v17, %v147_v34  ;;  %v158_v41 = vadd.f32 %v456_v17, %v157_v35 }
  0x97   :  { %v131_v42 = vadd.f32 %v456_v17, %v130_v37  ;;  %v141_v48 = vadd.f32 %v456_v17, %v140_v38 }
  0x98   :  { %v174_v43 = vmax.f32 %v148_v39, 0.0  ;;  %v477_v44 = vmax.f32 %v158_v41, 0.0 }
  0x99   :  { %v167_v47 = vmax.f32 %v131_v42, 0.0  ;;  %v171_v59 = vmax.f32 %v141_v48, 0.0 }
  0x9a   :  { %v360_v45 = vpack.c.bf16 %v174_v43, %v470_v36  ;;  %v370_v46 = vpack.c.bf16 %v477_v44, %v473_v40  ;;  %v211_v32 = vmul.f32 %v174_v43, %v174_v43 }
  0x9b   :  { %v204_v56 = vmul.f32 %v167_v47, %v167_v47  ;;  %v182_v61 = vadd.f32 %v181_v55, %v167_v47  ;;  %v208_v22 = vmul.f32 %v171_v59, %v171_v59 }
  0x9c   :  { %380 = vst [vmem:[%s522_s3 + $0x20] sm:$0xff] %v360_v45   ;;  %v214_v45 = vmul.f32 %v473_v40, %v473_v40 }
  0x9d   :  { %v150_v50 = vpop.f32.mrf.mxu2  ;;  %382 = vst [vmem:[%s522_s3 + $0x30] sm:$0xff] %v370_v46   ;;  %v160_v51 = vpop.f32.mrf.mxu3  ;;  %v219_v2 = vadd.f32 %v218_v60, %v204_v56 }
  0x9e   :  { %v132_v53 = vpop.f32.mrf.mxu0  ;;  %v142_v54 = vpop.f32.mrf.mxu1  ;;  %v151_v0 = vadd.f32 %v456_v17, %v150_v50  ;;  %v161_v1 = vadd.f32 %v456_v17, %v160_v51 }
  0x9f   :  { %v133_v57 = vadd.f32 %v456_v17, %v132_v53  ;;  %v143_v58 = vadd.f32 %v456_v17, %v142_v54 }
  0xa0   :  { %v175_v12 = vmax.f32 %v151_v0, 0.0  ;;  %v179_v14 = vmax.f32 %v161_v1, 0.0 }
  0xa1   :  { %v168_v62 = vmax.f32 %v133_v57, 0.0  ;;  %v172_v63 = vmax.f32 %v143_v58, 0.0 }
  0xa2   :  { %v212_v37 = vmul.f32 %v175_v12, %v175_v12 }
  0xa3   :  { %v183_v3 = vadd.f32 %v182_v61, %v168_v62  ;;  %v205_v4 = vmul.f32 %v168_v62, %v168_v62  ;;  %v345_v5 = vpack.c.bf16 %v168_v62, %v167_v47  ;;  %v355_v6 = vpack.c.bf16 %v172_v63, %v171_v59 }
  0xa4   :  { %v209_v28 = vmul.f32 %v172_v63, %v172_v63  ;;  %v215_v47 = vmul.f32 %v477_v44, %v477_v44 }
  0xa5   :  { %v184_v8 = vadd.f32 %v183_v3, %v169_v26  ;;  %v220_v9 = vadd.f32 %v219_v2, %v205_v4  ;;  %377 = vst [vmem:[%s522_s3 + $0x8] sm:$0xff] %v345_v5   ;;  %v152_v10 = vpop.f32.mrf.mxu2  ;;  %v162_v11 = vpop.f32.mrf.mxu3 }
  0xa6   :  { %379 = vst [vmem:[%s522_s3 + $0x18] sm:$0xff] %v355_v6   ;;  %v153_v13 = vadd.f32 %v456_v17, %v152_v10  ;;  %v163_v15 = vadd.f32 %v456_v17, %v162_v11  ;;  %v210_v17 = vmul.f32 %v470_v36, %v470_v36 }
  0xa7   :  { %v221_v18 = vadd.f32 %v220_v9, %v206_v7  ;;  %v185_v19 = vadd.f32 %v184_v8, %v170_v29 }
  0xa8   :  { %v176_v20 = vmax.f32 %v153_v13, 0.0  ;;  %v180_v21 = vmax.f32 %v163_v15, 0.0 }
  0xa9   :  { %v186_v23 = vadd.f32 %v185_v19, %v171_v59  ;;  %v222_v24 = vadd.f32 %v221_v18, %v207_v16 }
  0xaa   :  { %v365_v25 = vpack.c.bf16 %v176_v20, %v175_v12  ;;  %v375_v26 = vpack.c.bf16 %v180_v21, %v179_v14  ;;  %v213_v42 = vmul.f32 %v176_v20, %v176_v20  ;;  %v217_v54 = vmul.f32 %v180_v21, %v180_v21 }
  0xab   :  { %v187_v27 = vadd.f32 %v186_v23, %v172_v63  ;;  %v223_v30 = vadd.f32 %v222_v24, %v208_v22 }
  0xac   :  { %381 = vst [vmem:[%s522_s3 + $0x28] sm:$0xff] %v365_v25  }
  0xad   :  { %v188_v31 = vadd.f32 %v187_v27, %v470_v36  ;;  %v224_v29 = vadd.f32 %v223_v30, %v209_v28  ;;  %383 = vst [vmem:[%s522_s3 + $0x38] sm:$0xff] %v375_v26  }
  0xaf   :  { %v225_v33 = vadd.f32 %v224_v29, %v210_v17  ;;  %v189_v34 = vadd.f32 %v188_v31, %v174_v43  ;;  %v216_v43 = vmul.f32 %v179_v14, %v179_v14 }
  0xb1   :  { %v190_v35 = vadd.f32 %v189_v34, %v175_v12  ;;  %v226_v38 = vadd.f32 %v225_v33, %v211_v32 }
  0xb3   :  { %v227_v39 = vadd.f32 %v226_v38, %v212_v37  ;;  %v191_v41 = vadd.f32 %v190_v35, %v176_v20 }
  0xb5   :  { %v192_v46 = vadd.f32 %v191_v41, %v473_v40  ;;  %v228_v36 = vadd.f32 %v227_v39, %v213_v42 }
  0xb7   :  { %v229_v48 = vadd.f32 %v228_v36, %v214_v45  ;;  %v193_v49 = vadd.f32 %v192_v46, %v477_v44 }
  0xb9   :  { %v194_v50 = vadd.f32 %v193_v49, %v179_v14  ;;  %v230_v51 = vadd.f32 %v229_v48, %v215_v47 }
  0xbb   :  { %v231_v52 = vadd.f32 %v230_v51, %v216_v43  ;;  %v195_v53 = vadd.f32 %v194_v50, %v180_v21 }
  0xbd   :  { %v196_v55 = vrot.slane %v195_v53, 4  ;;  %v232_v56 = vadd.f32 %v231_v52, %v217_v54 }
  0xbf   :  { %v197_v57 = vadd.f32 %v196_v55, %v195_v53  ;;  %v233_v58 = vrot.slane %v232_v56, 4 }
  0xc1   :  { %v198_v59 = vrot.slane %v197_v57, 2  ;;  %v234_v60 = vadd.f32 %v233_v58, %v232_v56 }
  0xc3   :  { %v199_v40 = vadd.f32 %v198_v59, %v197_v57  ;;  %v235_v61 = vrot.slane %v234_v60, 2 }
  0xc5   :  { %v200_v62 = vrot.slane %v199_v40, 1  ;;  %v236_v63 = vadd.f32 %v235_v61, %v234_v60 }
  0xc7   :  { %v237_v0 = vrot.slane %v236_v63, 1  ;;  %v201_v1 = vadd.f32 %v200_v62, %v199_v40 }
  0xc9   :  { %v238_v44 = vadd.f32 %v237_v0, %v236_v63 }
  0xcb   :  { %v240_v2 = vsel %vm239_vm3, %v201_v1, %v238_v44 }
  0xcc   :  { %v242_v3 = vsel %vm241_vm4, %v240_v2, 0.0 }
  0xcd   :  { %243 = vst [vmem:[%s523_s4] sm:$0xff] %v242_v3 }

// kernel: _lambda_.10
= control target key start
LH: loop header
LB: loop body
LE: loop exit
PB: predicated region body
PF: predicated region fallthrough
CT: control target
= control target key end

     0   :  { %vm62_vm0 = vcmask 1041408   ;;  %vm55_vm1 = vcmask 293888   ;;  %vm111_vm2 = vcmask 1040384   ;;  %s222_s1 = inlined_call_operand.vmem [shape: bf16[36,128], index: 1, kind: input, shape index: {}]   ;;  %s223_s2 = inlined_call_operand.vmem [shape: f32[1,128], index: 2, kind: input, shape index: {}]   ;;  %s224_s0 = inlined_call_operand.vmem [shape: bf16[32,36], index: 0, kind: input, shape index: {}]   ;;  %s225_s3 = inlined_call_operand.vmem [shape: bf16[32,128], index: 3, kind: output, shape index: {0}]   ;;  %s226_s4 = inlined_call_operand.vmem [shape: f32[8,128], index: 4, kind: output, shape index: {1}]  }
   0x1   :  { %v25_v0 = vld [vmem:[%s222_s1 + $0x10] sm:$0x3]  ;;  %v152_v4 = vld [vmem:[%s222_s1 + $0x8] sm:$0xff]  ;;  %v151_v5 = vld [vmem:[%s222_s1] sm:$0xff] }
   0x2   :  { %v49_v1 = vunpack.c.l.b16 %v25_v0  ;;  %v149_v6 = vld [vmem:[%s224_s0] sm:$0xff]  ;;  %v150_v7 = vld [vmem:[%s224_s0 + $0x8] sm:$0xff] }
   0x3   :  { %v167_v10 = vld [vmem:[%s223_s2] ss:$0 sm:$0xff] }
   0x4   :  { %v52_v2 = vpack.c.b16 %v49_v1, %v49_v1 }
   0x6   :  { %v64_v3 = vsel %vm62_vm0, %v52_v2, 0 }
   0x7   :  { %71 = vmatpush.bf16.msra.mxu0 %v64_v3  ;;  %164 = vmatpush.bf16.msra.mxu1 %v64_v3 }
   0xb   :  { %72 = vmatpush.bf16.msra.mxu0 %v152_v4  ;;  %165 = vmatpush.bf16.msra.mxu1 %v152_v4 }
   0xf   :  { %73 = vmatpush.bf16.msra.mxu0 %v151_v5  ;;  %166 = vmatpush.bf16.msra.mxu1 %v151_v5 }
  0x12   :  { %147 = vmatmul.msk.bf16.vlgmr.msra.gmra.mxu0 %vm55_vm1, %v149_v6  ;;  %148 = vmatmul.msk.bf16.vlgmr.msra.gmra.mxu1 %vm55_vm1, %v150_v7 }
  0x8f   :  { %v75_v8 = vpop.f32.mrf.mxu0  ;;  %v80_v9 = vpop.f32.mrf.mxu1 }
  0x90   :  { %v76_v11 = vadd.f32 %v167_v10, %v75_v8  ;;  %v81_v12 = vadd.f32 %v167_v10, %v80_v9 }
  0x92   :  { %v85_v15 = vmax.f32 %v76_v11, 0.0  ;;  %v87_v18 = vmax.f32 %v81_v12, 0.0 }
  0x94   :  { %v98_v21 = vmul.f32 %v85_v15, %v85_v15  ;;  %v100_v26 = vmul.f32 %v87_v18, %v87_v18 }
  0x97   :  { %v77_v13 = vpop.f32.mrf.mxu0  ;;  %v82_v14 = vpop.f32.mrf.mxu1 }
  0x98   :  { %v78_v16 = vadd.f32 %v167_v10, %v77_v13  ;;  %v83_v17 = vadd.f32 %v167_v10, %v82_v14 }
  0x9a   :  { %v86_v19 = vmax.f32 %v78_v16, 0.0  ;;  %v88_v20 = vmax.f32 %v83_v17, 0.0 }
  0x9c   :  { %v89_v22 = vadd.f32 %v86_v19, %v85_v15  ;;  %v99_v23 = vmul.f32 %v86_v19, %v86_v19  ;;  %v156_v24 = vpack.c.bf16 %v86_v19, %v85_v15  ;;  %v161_v25 = vpack.c.bf16 %v88_v20, %v87_v18 }
  0x9d   :  { %v101_v30 = vmul.f32 %v88_v20, %v88_v20 }
  0x9e   :  { %v102_v27 = vadd.f32 %v99_v23, %v98_v21  ;;  %157 = vst [vmem:[%s225_s3] sm:$0xff] %v156_v24   ;;  %v90_v28 = vadd.f32 %v89_v22, %v87_v18 }
  0x9f   :  { %163 = vst [vmem:[%s225_s3 + $0x8] sm:$0xff] %v161_v25  }
  0xa0   :  { %v91_v29 = vadd.f32 %v90_v28, %v88_v20  ;;  %v103_v31 = vadd.f32 %v102_v27, %v100_v26 }
  0xa2   :  { %v92_v32 = vrot.slane %v91_v29, 4  ;;  %v104_v33 = vadd.f32 %v103_v31, %v101_v30 }
  0xa4   :  { %v93_v34 = vadd.f32 %v92_v32, %v91_v29  ;;  %v105_v35 = vrot.slane %v104_v33, 4 }
  0xa6   :  { %v94_v36 = vrot.slane %v93_v34, 2  ;;  %v106_v37 = vadd.f32 %v105_v35, %v104_v33 }
  0xa8   :  { %v95_v38 = vadd.f32 %v94_v36, %v93_v34  ;;  %v107_v39 = vrot.slane %v106_v37, 2 }
  0xaa   :  { %v96_v40 = vrot.slane %v95_v38, 1  ;;  %v108_v41 = vadd.f32 %v107_v39, %v106_v37 }
  0xac   :  { %v109_v42 = vrot.slane %v108_v41, 1  ;;  %v97_v43 = vadd.f32 %v96_v40, %v95_v38 }
  0xae   :  { %v110_v44 = vadd.f32 %v109_v42, %v108_v41 }
  0xb0   :  { %v112_v45 = vsel %vm111_vm2, %v97_v43, %v110_v44 }
  0xb1   :  { %v113_v46 = vsel %vm62_vm0, %v112_v45, 0.0 }
  0xb2   :  { %114 = vst [vmem:[%s226_s4] sm:$0xff] %v113_v46 }

// kernel: _lambda_.11
= control target key start
LH: loop header
LB: loop body
LE: loop exit
PB: predicated region body
PF: predicated region fallthrough
CT: control target
= control target key end

     0   :  { %s110_s0 = inlined_call_operand.vmem [shape: bf16[32,128], index: 0, kind: input, shape index: {}]   ;;  %s111_s1 = inlined_call_operand.vmem [shape: f32[1,128], index: 1, kind: input, shape index: {}]   ;;  %s112_s2 = inlined_call_operand.vmem [shape: f32[1,128], index: 2, kind: input, shape index: {}]   ;;  %s113_s3 = inlined_call_operand.vmem [shape: bf16[32,128], index: 3, kind: output, shape index: {}]  }
   0x1   :  { %v51_v0 = vld [vmem:[%s110_s0] sm:$0xff]   ;;  %v68_v5 = vld [vmem:[%s110_s0 + $0x8] sm:$0xff]  }
   0x2   :  { %v70_v1 = vld [vmem:[%s111_s1] ss:$0 sm:$0xff]  ;;  %v52_v2 = vunpack.c.l.bf16 %v51_v0  ;;  %v53_v3 = vunpack.c.h.bf16 %v51_v0  ;;  %v56_v6 = vunpack.c.l.bf16 %v68_v5  ;;  %v57_v7 = vunpack.c.h.bf16 %v68_v5 }
   0x3   :  { %v71_v4 = vld [vmem:[%s112_s2] ss:$0 sm:$0xff] }
   0x4   :  { %v26_v8 = vmul.f32 %v70_v1, %v52_v2  ;;  %v27_v9 = vmul.f32 %v70_v1, %v53_v3  ;;  %v28_v10 = vmul.f32 %v70_v1, %v56_v6  ;;  %v29_v11 = vmul.f32 %v70_v1, %v57_v7 }
   0x6   :  { %v34_v12 = vadd.f32 %v71_v4, %v26_v8  ;;  %v35_v13 = vadd.f32 %v71_v4, %v27_v9  ;;  %v36_v14 = vadd.f32 %v71_v4, %v28_v10  ;;  %v37_v15 = vadd.f32 %v71_v4, %v29_v11 }
   0x8   :  { %v61_v16 = vpack.c.bf16 %v35_v13, %v34_v12  ;;  %v66_v17 = vpack.c.bf16 %v37_v15, %v36_v14 }
   0xa   :  { %62 = vst [vmem:[%s113_s3] sm:$0xff] %v61_v16  }
   0xb   :  { %69 = vst [vmem:[%s113_s3 + $0x8] sm:$0xff] %v66_v17  }

// kernel: _lambda_.12
= control target key start
LH: loop header
LB: loop body
LE: loop exit
PB: predicated region body
PF: predicated region fallthrough
CT: control target
= control target key end

     0   :  { %vm246_vm0 = vcmask 1041408   ;;  %vm248_vm1 = vcmask 1045508   ;;  %vm250_vm2 = vcmask 1043456   ;;  %s877_s1 = inlined_call_operand.vmem [shape: bf16[128,384], index: 1, kind: input, shape index: {}]   ;;  %s878_s4 = inlined_call_operand.vmem [shape: bf16[256,128], index: 4, kind: input, shape index: {}]   ;;  %s879_s0 = inlined_call_operand.vmem [shape: bf16[2,128], index: 0, kind: input, shape index: {}]   ;;  %s880_s2 = inlined_call_operand.vmem [shape: f32[1,384], index: 2, kind: input, shape index: {}]   ;;  %s881_s3 = inlined_call_operand.vmem [shape: f32[2,128], index: 3, kind: input, shape index: {}]   ;;  %s882_s5 = inlined_call_operand.vmem [shape: f32[1,128], index: 5, kind: input, shape index: {}]   ;;  %s883_s6 = inlined_call_operand.vmem [shape: f32[2,512], index: 6, kind: output, shape index: {0}]   ;;  %s884_s7 = inlined_call_operand.vmem [shape: bf16[2,128], index: 7, kind: output, shape index: {1}]  }
   0x1   :  { %v605_v0 = vld [vmem:[%s877_s1 + $0xac] sm:$0xf]  ;;  %v512_v1 = vld [vmem:[%s877_s1 + $0xb4] sm:$0xf0]  ;;  %v510_v2 = vld [vmem:[%s877_s1 + $0xa8] sm:$0xf] }
   0x2   :  { %v515_v3 = vor.u32 %v605_v0, %v512_v1  ;;  %v606_v4 = vld [vmem:[%s877_s1 + $0xb0] sm:$0xf0]  ;;  %v500_v6 = vld [vmem:[%s877_s1 + $0x9c] sm:$0xf0]  ;;  %v498_v8 = vld [vmem:[%s877_s1 + $0x90] sm:$0xf] }
   0x3   :  { %v602_v5 = vld [vmem:[%s877_s1 + $0x94] sm:$0xf]  ;;  %v511_v7 = vor.u32 %v606_v4, %v510_v2  ;;  %v603_v9 = vld [vmem:[%s877_s1 + $0x98] sm:$0xf0]  ;;  %v518_v10 = vld [vmem:[%s877_s1 + $0xb0] sm:$0xf] }
   0x4   :  { %207 = vmatpush.bf16.msra.mxu1 %v515_v3  ;;  %v503_v11 = vor.u32 %v602_v5, %v500_v6  ;;  %v607_v12 = vld [vmem:[%s877_s1 + $0xb8] sm:$0xf0]  ;;  %v499_v13 = vor.u32 %v603_v9, %v498_v8  ;;  %v488_v16 = vld [vmem:[%s877_s1 + $0x84] sm:$0xf0]  ;;  %v506_v17 = vld [vmem:[%s877_s1 + $0x98] sm:$0xf] }
   0x5   :  { %194 = vmatpush.bf16.msra.mxu0 %v511_v7  ;;  %v519_v14 = vor.u32 %v607_v12, %v518_v10  ;;  %v599_v15 = vld [vmem:[%s877_s1 + $0x7c] sm:$0xf]  ;;  %v486_v18 = vld [vmem:[%s877_s1 + $0x78] sm:$0xf]  ;;  %v600_v19 = vld [vmem:[%s877_s1 + $0x80] sm:$0xf0] }
   0x6   :  { %v604_v20 = vld [vmem:[%s877_s1 + $0xa0] sm:$0xf0]  ;;  %v491_v22 = vor.u32 %v599_v15, %v488_v16  ;;  %v494_v23 = vld [vmem:[%s877_s1 + $0x80] sm:$0xf]  ;;  %v601_v24 = vld [vmem:[%s877_s1 + $0x88] sm:$0xf0]  ;;  %v487_v25 = vor.u32 %v600_v19, %v486_v18 }
   0x7   :  { %220 = vmatpush.bf16.msra.mxu2 %v519_v14  ;;  %v507_v21 = vor.u32 %v604_v20, %v506_v17  ;;  %v596_v26 = vld [vmem:[%s877_s1 + $0x64] sm:$0xf]  ;;  %v476_v27 = vld [vmem:[%s877_s1 + $0x6c] sm:$0xf0]  ;;  %v474_v28 = vld [vmem:[%s877_s1 + $0x60] sm:$0xf]  ;;  %v495_v30 = vor.u32 %v601_v24, %v494_v23 }
   0x8   :  { %208 = vmatpush.bf16.msra.mxu1 %v503_v11  ;;  %v597_v29 = vld [vmem:[%s877_s1 + $0x68] sm:$0xf0]  ;;  %v479_v31 = vor.u32 %v596_v26, %v476_v27  ;;  %v482_v32 = vld [vmem:[%s877_s1 + $0x68] sm:$0xf]  ;;  %v598_v33 = vld [vmem:[%s877_s1 + $0x70] sm:$0xf0] }
   0x9   :  { %195 = vmatpush.bf16.msra.mxu0 %v499_v13  ;;  %v475_v34 = vor.u32 %v597_v29, %v474_v28  ;;  %v593_v35 = vld [vmem:[%s877_s1 + $0x4c] sm:$0xf]  ;;  %v464_v36 = vld [vmem:[%s877_s1 + $0x54] sm:$0xf0]  ;;  %v462_v37 = vld [vmem:[%s877_s1 + $0x48] sm:$0xf]  ;;  %v483_v39 = vor.u32 %v598_v33, %v482_v32 }
   0xa   :  { %v594_v38 = vld [vmem:[%s877_s1 + $0x50] sm:$0xf0]  ;;  %v467_v40 = vor.u32 %v593_v35, %v464_v36  ;;  %v470_v41 = vld [vmem:[%s877_s1 + $0x50] sm:$0xf]  ;;  %v595_v42 = vld [vmem:[%s877_s1 + $0x58] sm:$0xf0] }
   0xb   :  { %221 = vmatpush.bf16.msra.mxu2 %v507_v21  ;;  %v463_v43 = vor.u32 %v594_v38, %v462_v37  ;;  %v590_v44 = vld [vmem:[%s877_s1 + $0x34] sm:$0xf]  ;;  %v452_v45 = vld [vmem:[%s877_s1 + $0x3c] sm:$0xf0]  ;;  %v615_v46 = vld [vmem:[%s878_s4 + $0x38] sm:$0xff]  ;;  %v471_v49 = vor.u32 %v595_v42, %v470_v41 }
   0xc   :  { %209 = vmatpush.bf16.msra.mxu1 %v491_v22  ;;  %v450_v47 = vld [vmem:[%s877_s1 + $0x30] sm:$0xf]  ;;  %v591_v48 = vld [vmem:[%s877_s1 + $0x38] sm:$0xf0]  ;;  %388 = vmatpush.bf16.msra.mxu3 %v615_v46  ;;  %v455_v51 = vor.u32 %v590_v44, %v452_v45  ;;  %v458_v52 = vld [vmem:[%s877_s1 + $0x38] sm:$0xf] }
   0xd   :  { %196 = vmatpush.bf16.msra.mxu0 %v487_v25  ;;  %v614_v50 = vld [vmem:[%s878_s4 + $0x30] sm:$0xff]  ;;  %v592_v53 = vld [vmem:[%s877_s1 + $0x40] sm:$0xf0]  ;;  %v451_v54 = vor.u32 %v591_v48, %v450_v47  ;;  %v587_v55 = vld [vmem:[%s877_s1 + $0x1c] sm:$0xf] }
   0xe   :  { %v440_v56 = vld [vmem:[%s877_s1 + $0x24] sm:$0xf0]  ;;  %v438_v57 = vld [vmem:[%s877_s1 + $0x18] sm:$0xf]  ;;  %v588_v58 = vld [vmem:[%s877_s1 + $0x20] sm:$0xf0]  ;;  %v459_v59 = vor.u32 %v592_v53, %v458_v52 }
   0xf   :  { %222 = vmatpush.bf16.msra.mxu2 %v495_v30  ;;  %v613_v60 = vld [vmem:[%s878_s4 + $0x28] sm:$0xff]  ;;  %v443_v61 = vor.u32 %v587_v55, %v440_v56  ;;  %v446_v62 = vld [vmem:[%s877_s1 + $0x20] sm:$0xf]  ;;  %v439_v0 = vor.u32 %v588_v58, %v438_v57  ;;  %v584_v1 = vld [vmem:[%s877_s1 + $0x4] sm:$0xf] }
  0x10   :  { %210 = vmatpush.bf16.msra.mxu1 %v479_v31  ;;  %389 = vmatpush.bf16.msra.mxu3 %v614_v50  ;;  %v589_v63 = vld [vmem:[%s877_s1 + $0x28] sm:$0xf0]  ;;  %v428_v2 = vld [vmem:[%s877_s1 + $0xc] sm:$0xf0]  ;;  %v426_v3 = vld [vmem:[%s877_s1] sm:$0xf] }
  0x11   :  { %197 = vmatpush.bf16.msra.mxu0 %v475_v34  ;;  %v585_v4 = vld [vmem:[%s877_s1 + $0x8] sm:$0xf0]  ;;  %v447_v5 = vor.u32 %v589_v63, %v446_v62  ;;  %v431_v6 = vor.u32 %v584_v1, %v428_v2  ;;  %v434_v7 = vld [vmem:[%s877_s1 + $0x8] sm:$0xf]  ;;  %v586_v8 = vld [vmem:[%s877_s1 + $0x10] sm:$0xf0] }
  0x12   :  { %v427_v9 = vor.u32 %v585_v4, %v426_v3  ;;  %v623_v10 = vld [vmem:[%s878_s4 + $0x78] sm:$0xff]  ;;  %v435_v11 = vor.u32 %v586_v8, %v434_v7  ;;  %v25_v12 = vld [vmem:[%s879_s0] sm:$0x1]  ;;  %v622_v13 = vld [vmem:[%s878_s4 + $0x70] sm:$0xff] }
  0x13   :  { %223 = vmatpush.bf16.msra.mxu2 %v483_v39  ;;  %v621_v14 = vld [vmem:[%s878_s4 + $0x68] sm:$0xff]  ;;  %v620_v15 = vld [vmem:[%s878_s4 + $0x60] sm:$0xff]  ;;  %v619_v17 = vld [vmem:[%s878_s4 + $0x58] sm:$0xff] }
  0x14   :  { %211 = vmatpush.bf16.msra.mxu1 %v467_v40  ;;  %390 = vmatpush.bf16.msra.mxu3 %v613_v60  ;;  %v612_v16 = vld [vmem:[%s878_s4 + $0x20] sm:$0xff]  ;;  %v611_v18 = vld [vmem:[%s878_s4 + $0x18] sm:$0xff]  ;;  %v618_v19 = vld [vmem:[%s878_s4 + $0x50] sm:$0xff] }
  0x15   :  { %198 = vmatpush.bf16.msra.mxu0 %v463_v43  ;;  %v610_v20 = vld [vmem:[%s878_s4 + $0x10] sm:$0xff]  ;;  %v617_v21 = vld [vmem:[%s878_s4 + $0x48] sm:$0xff]  ;;  %v616_v23 = vld [vmem:[%s878_s4 + $0x40] sm:$0xff] }
  0x16   :  { %v609_v22 = vld [vmem:[%s878_s4 + $0x8] sm:$0xff]  ;;  %v608_v24 = vld [vmem:[%s878_s4] sm:$0xff] }
  0x17   :  { %224 = vmatpush.bf16.msra.mxu2 %v471_v49  ;;  %v58_v25 = vld [vmem:[%s880_s2] sm:$0x7] }
  0x18   :  { %212 = vmatpush.bf16.msra.mxu1 %v455_v51  ;;  %391 = vmatpush.bf16.msra.mxu3 %v612_v16  ;;  %v61_v26 = vperm.slane %v58_v25, 1  ;;  %v62_v32 = vperm.slane %v58_v25, 2  ;;  %v60_v36 = vperm.slane %v58_v25, 0  ;;  %v233_v38 = vld [vmem:[%s881_s3] sm:$0x3] }
  0x19   :  { %199 = vmatpush.bf16.msra.mxu0 %v451_v54  ;;  %v624_v54 = vld [vmem:[%s882_s5] ss:$0 sm:$0xff] }
  0x1b   :  { %225 = vmatpush.bf16.msra.mxu2 %v459_v59 }
  0x1c   :  { %213 = vmatpush.bf16.msra.mxu1 %v443_v61  ;;  %392 = vmatpush.bf16.msra.mxu3 %v611_v18 }
  0x1d   :  { %200 = vmatpush.bf16.msra.mxu0 %v439_v0 }
  0x1f   :  { %226 = vmatpush.bf16.msra.mxu2 %v447_v5 }
  0x20   :  { %214 = vmatpush.bf16.msra.mxu1 %v431_v6  ;;  %393 = vmatpush.bf16.msra.mxu3 %v610_v20 }
  0x21   :  { %201 = vmatpush.bf16.msra.mxu0 %v427_v9 }
  0x23   :  { %215 = vmatmul.bf16.vlgmr.msra.gmra.mxu1 %v25_v12  ;;  %227 = vmatpush.bf16.msra.mxu2 %v435_v11 }
  0x24   :  { %202 = vmatmul.bf16.vlgmr.msra.gmra.mxu0 %v25_v12  ;;  %394 = vmatpush.bf16.msra.mxu3 %v609_v22 }
  0x25   :  { %401 = vmatpush.bf16.msrb.mxu0 %v623_v10 }
  0x26   :  { %228 = vmatmul.bf16.vlgmr.msra.gmra.mxu2 %v25_v12 }
  0x28   :  { %395 = vmatpush.bf16.msra.mxu3 %v608_v24 }
  0x29   :  { %402 = vmatpush.bf16.msrb.mxu0 %v622_v13 }
  0x2d   :  { %403 = vmatpush.bf16.msrb.mxu0 %v621_v14 }
  0x31   :  { %404 = vmatpush.bf16.msrb.mxu0 %v620_v15 }
  0x35   :  { %405 = vmatpush.bf16.msrb.mxu0 %v619_v17 }
  0x39   :  { %406 = vmatpush.bf16.msrb.mxu0 %v618_v19 }
  0x3d   :  { %407 = vmatpush.bf16.msrb.mxu0 %v617_v21 }
  0x41   :  { %408 = vmatpush.bf16.msrb.mxu0 %v616_v23 }
  0xa0   :  { %v216_v27 = vpop.f32.mrf.mxu1 }
  0xa1   :  { %v217_v28 = vadd.f32 %v216_v27, %v61_v26  ;;  %v203_v29 = vpop.f32.mrf.mxu0 }
  0xa2   :  { %v204_v41 = vadd.f32 %v203_v29, %v60_v36 }
  0xa3   :  { %v234_v30 = vmul.f32 0.5, %v217_v28  ;;  %v243_v43 = vrot.slane %v217_v28, 6 }
  0xa5   :  { %v235_v31 = vmul.f32 1.442695, %v234_v30  ;;  %v247_v49 = vsel %vm246_vm0, %v204_v41, %v243_v43 }
  0xa7   :  { %625 = vpow2.f32 %v235_v31 }
  0xa8   :  { %v218_v33 = vpop.f32.mrf.mxu1 }
  0xa9   :  { %v205_v34 = vpop.f32.mrf.mxu0  ;;  %v229_v35 = vpop.f32.mrf.mxu2 }
  0xaa   :  { %v230_v37 = vadd.f32 %v229_v35, %v62_v32 }
  0xac   :  { %v255_v39 = vpack.c.bf16 %v230_v37, %v230_v37  ;;  %v244_v45 = vrot.slane %v230_v37, 4 }
  0xad   :  { %v626_v40 = vpop.eup %625 }
  0xae   :  { %v237_v42 = vmul.f32 %v626_v40, %v233_v38  ;;  %409 = vmatmul.bf16.vlgmr.msrb.gmra.mxu0 %v255_v39 }
  0xb0   :  { %v238_v44 = vadd.f32 %v237_v42, %v204_v41 }
  0xb1   :  { %v231_v46 = vpop.f32.mrf.mxu2 }
  0xb2   :  { %v245_v47 = vrot.slane %v238_v44, 2  ;;  %v254_v48 = vpack.c.bf16 %v238_v44, %v238_v44 }
  0xb4   :  { %v249_v50 = vsel %vm248_vm1, %v244_v45, %v245_v47  ;;  %396 = vmatmul.bf16.vlgmr.msra.gmra.mxu3 %v254_v48 }
  0xb5   :  { %v251_v51 = vsel %vm250_vm2, %v247_v49, %v249_v50 }
  0xb6   :  { %253 = vst [vmem:[%s883_s6] sm:$0xff] %v251_v51 }
 0x12b   :  { %v410_v52 = vpop.f32.mrf.mxu0 }
 0x133   :  { %v412_v53 = vpop.f32.mrf.mxu0 }
 0x137   :  { %v397_v55 = vpop.f32.mrf.mxu3 }
 0x138   :  { %v398_v56 = vadd.f32 %v624_v54, %v397_v55 }
 0x13a   :  { %v411_v57 = vadd.f32 %v410_v52, %v398_v56 }
 0x13c   :  { %v414_v58 = vpack.c.bf16 %v411_v57, %v411_v57 }
 0x13e   :  { %415 = vst [vmem:[%s884_s7] sm:$0x1] %v414_v58 }
 0x13f   :  { %v399_v59 = vpop.f32.mrf.mxu3 }

// kernel: tile.17
= control target key start
LH: loop header
LB: loop body
LE: loop exit
PB: predicated region body
PF: predicated region fallthrough
CT: control target
= control target key end

     0   :  { %s22_s0 = inlined_call_operand.vmem [shape: f32[32], index: 0, kind: input, shape index: {}]   ;;  %s23_s1 = inlined_call_operand.vmem [shape: f32[4,32], index: 1, kind: output, shape index: {}]  }
   0x1   :  { %v4_v0 = vld [vmem:[%s22_s0] ss:$0 sm:$0xff] }
   0x2   :  { %5 = vst [vmem:[%s23_s1] sm:$0xf] %v4_v0 }

// kernel: tile.19
= control target key start
LH: loop header
LB: loop body
LE: loop exit
PB: predicated region body
PF: predicated region fallthrough
CT: control target
= control target key end

     0   :  { %s37_s8 = smov 32   ;;  %s38_s9 = smov 64   ;;  %vm7_vm0 = vcmask 261120   ;;  %vm13_vm1 = vcmask 1048320   ;;  %vm19_vm2 = vcmask 785920   ;;  %vm25_vm3 = vcmask 523520   ;;  %s55_s0 = inlined_call_operand.vmem [shape: f32[4,32], index: 0, kind: input, shape index: {}]   ;;  %s56_s1 = inlined_call_operand.vmem [shape: f32[1,128], index: 1, kind: output, shape index: {}]  }
   0x1   :  { %v4_v0 = vld [vmem:[%s55_s0] sm:$0xf]  ;;  %s36_s0 = smov 96  }
   0x2   :  { %5 = vst [vmem:[#allocation1] sm:$0xf] %v4_v0 }
   0x9   :  { %v10_v1 = vld [vmem:[#allocation1 + $0x3] sm:$0x1]   ;;  %v22_v2 = vld [vmem:[#allocation1 + $0x1] sm:$0x1]   ;;  %v16_v3 = vld [vmem:[#allocation1 + $0x2] sm:$0x1]  }
   0xa   :  { %11 = vrot.lane.b32.xlu0 %v10_v1, %s36_s0  ;;  %23 = vrot.lane.b32.xlu1 %v22_v2, %s37_s8  ;;  %v6_v4 = vld [vmem:[#allocation1] sm:$0x1]  }
   0xb   :  { %8 = vst.msk [vmem:[#allocation0] sm:$0x1] %vm7_vm0, %v6_v4  }
  0x12   :  { %17 = vrot.lane.b32.xlu0 %v16_v3, %s38_s9 }
  0x7c   :  { %v12_v5 = vpop.permute.xlu0 %11   ;;  %v24_v6 = vpop.permute.xlu1 %23  }
  0x7d   :  { %14 = vst.msk [vmem:[#allocation0] sm:$0x1] %vm13_vm1, %v12_v5  }
  0x84   :  { %v18_v7 = vpop.permute.xlu0 %17  }
  0x85   :  { %20 = vst.msk [vmem:[#allocation0] sm:$0x1] %vm19_vm2, %v18_v7  }
  0x86   :  { %26 = vst.msk [vmem:[#allocation0] sm:$0x1] %vm25_vm3, %v24_v6  }
  0x8d   :  { %v29_v8 = vld [vmem:[#allocation0] sm:$0x1] }
  0x8e   :  { %32 = vst [vmem:[%s56_s1] sm:$0x1] %v29_v8 }

// kernel: _lambda_.13
= control target key start
LH: loop header
LB: loop body
LE: loop exit
PB: predicated region body
PF: predicated region fallthrough
CT: control target
= control target key end

     0   :  { %vm78_vm0 = vcmask 1043456   ;;  %vm71_vm1 = vcmask 588800   ;;  %vm127_vm2 = vcmask 1040384   ;;  %vm129_vm3 = vcmask 1041408   ;;  %s255_s1 = inlined_call_operand.vmem [shape: bf16[72,128], index: 1, kind: input, shape index: {}]   ;;  %s256_s2 = inlined_call_operand.vmem [shape: f32[1,128], index: 2, kind: input, shape index: {}]   ;;  %s257_s0 = inlined_call_operand.vmem [shape: bf16[32,72], index: 0, kind: input, shape index: {}]   ;;  %s258_s3 = inlined_call_operand.vmem [shape: bf16[32,128], index: 3, kind: output, shape index: {0}]   ;;  %s259_s4 = inlined_call_operand.vmem [shape: f32[8,128], index: 4, kind: output, shape index: {1}]  }
   0x1   :  { %v29_v0 = vld [vmem:[%s255_s1 + $0x20] sm:$0xf]  ;;  %v179_v4 = vld [vmem:[%s255_s1 + $0x18] sm:$0xff]  ;;  %v178_v5 = vld [vmem:[%s255_s1 + $0x10] sm:$0xff] }
   0x2   :  { %v61_v1 = vunpack.c.l.b16 %v29_v0  ;;  %v177_v6 = vld [vmem:[%s255_s1 + $0x8] sm:$0xff]  ;;  %v176_v7 = vld [vmem:[%s255_s1] sm:$0xff] }
   0x3   :  { %v174_v8 = vld [vmem:[%s257_s0] sm:$0xff]  ;;  %v175_v9 = vld [vmem:[%s257_s0 + $0x8] sm:$0xff] }
   0x4   :  { %v66_v2 = vpack.c.b16 %v61_v1, %v61_v1  ;;  %v196_v12 = vld [vmem:[%s256_s2] ss:$0 sm:$0xff] }
   0x6   :  { %v80_v3 = vsel %vm78_vm0, %v66_v2, 0 }
   0x7   :  { %85 = vmatpush.bf16.msra.mxu0 %v80_v3  ;;  %191 = vmatpush.bf16.msra.mxu1 %v80_v3 }
   0xb   :  { %86 = vmatpush.bf16.msra.mxu0 %v179_v4  ;;  %192 = vmatpush.bf16.msra.mxu1 %v179_v4 }
   0xf   :  { %87 = vmatpush.bf16.msra.mxu0 %v178_v5  ;;  %193 = vmatpush.bf16.msra.mxu1 %v178_v5 }
  0x13   :  { %88 = vmatpush.bf16.msra.mxu0 %v177_v6  ;;  %194 = vmatpush.bf16.msra.mxu1 %v177_v6 }
  0x17   :  { %89 = vmatpush.bf16.msra.mxu0 %v176_v7  ;;  %195 = vmatpush.bf16.msra.mxu1 %v176_v7 }
  0x1a   :  { %172 = vmatmul.msk.bf16.vlgmr.msra.gmra.mxu0 %vm71_vm1, %v174_v8  ;;  %173 = vmatmul.msk.bf16.vlgmr.msra.gmra.mxu1 %vm71_vm1, %v175_v9 }
  0x97   :  { %v91_v10 = vpop.f32.mrf.mxu0  ;;  %v96_v11 = vpop.f32.mrf.mxu1 }
  0x98   :  { %v92_v13 = vadd.f32 %v196_v12, %v91_v10  ;;  %v97_v14 = vadd.f32 %v196_v12, %v96_v11 }
  0x9a   :  { %v101_v17 = vmax.f32 %v92_v13, 0.0  ;;  %v103_v20 = vmax.f32 %v97_v14, 0.0 }
  0x9c   :  { %v114_v23 = vmul.f32 %v101_v17, %v101_v17  ;;  %v116_v28 = vmul.f32 %v103_v20, %v103_v20 }
  0x9f   :  { %v93_v15 = vpop.f32.mrf.mxu0  ;;  %v98_v16 = vpop.f32.mrf.mxu1 }
  0xa0   :  { %v94_v18 = vadd.f32 %v196_v12, %v93_v15  ;;  %v99_v19 = vadd.f32 %v196_v12, %v98_v16 }
  0xa2   :  { %v102_v21 = vmax.f32 %v94_v18, 0.0  ;;  %v104_v22 = vmax.f32 %v99_v19, 0.0 }
  0xa4   :  { %v105_v24 = vadd.f32 %v102_v21, %v101_v17  ;;  %v115_v25 = vmul.f32 %v102_v21, %v102_v21  ;;  %v183_v26 = vpack.c.bf16 %v102_v21, %v101_v17  ;;  %v188_v27 = vpack.c.bf16 %v104_v22, %v103_v20 }
  0xa5   :  { %v117_v32 = vmul.f32 %v104_v22, %v104_v22 }
  0xa6   :  { %v118_v29 = vadd.f32 %v115_v25, %v114_v23  ;;  %184 = vst [vmem:[%s258_s3] sm:$0xff] %v183_v26   ;;  %v106_v30 = vadd.f32 %v105_v24, %v103_v20 }
  0xa7   :  { %190 = vst [vmem:[%s258_s3 + $0x8] sm:$0xff] %v188_v27  }
  0xa8   :  { %v107_v31 = vadd.f32 %v106_v30, %v104_v22  ;;  %v119_v33 = vadd.f32 %v118_v29, %v116_v28 }
  0xaa   :  { %v108_v34 = vrot.slane %v107_v31, 4  ;;  %v120_v35 = vadd.f32 %v119_v33, %v117_v32 }
  0xac   :  { %v109_v36 = vadd.f32 %v108_v34, %v107_v31  ;;  %v121_v37 = vrot.slane %v120_v35, 4 }
  0xae   :  { %v110_v38 = vrot.slane %v109_v36, 2  ;;  %v122_v39 = vadd.f32 %v121_v37, %v120_v35 }
  0xb0   :  { %v111_v40 = vadd.f32 %v110_v38, %v109_v36  ;;  %v123_v41 = vrot.slane %v122_v39, 2 }
  0xb2   :  { %v112_v42 = vrot.slane %v111_v40, 1  ;;  %v124_v43 = vadd.f32 %v123_v41, %v122_v39 }
  0xb4   :  { %v125_v44 = vrot.slane %v124_v43, 1  ;;  %v113_v45 = vadd.f32 %v112_v42, %v111_v40 }
  0xb6   :  { %v126_v46 = vadd.f32 %v125_v44, %v124_v43 }
  0xb8   :  { %v128_v47 = vsel %vm127_vm2, %v113_v45, %v126_v46 }
  0xb9   :  { %v130_v48 = vsel %vm129_vm3, %v128_v47, 0.0 }
  0xba   :  { %131 = vst [vmem:[%s259_s4] sm:$0xff] %v130_v48 }

// kernel: _lambda_.15
= control target key start
LH: loop header
LB: loop body
LE: loop exit
PB: predicated region body
PF: predicated region fallthrough
CT: control target
= control target key end

     0   :  { %vm120_vm0 = vcmask 1041408   ;;  %vm95_vm1 = vcmask 293888   ;;  %s519_s1 = inlined_call_operand.vmem [shape: bf16[36,128], index: 1, kind: input, shape index: {}]   ;;  %s520_s2 = inlined_call_operand.vmem [shape: f32[1,128], index: 2, kind: input, shape index: {}]   ;;  %s521_s0 = inlined_call_operand.vmem [shape: bf16[128,36], index: 0, kind: input, shape index: {}]   ;;  %s522_s3 = inlined_call_operand.vmem [shape: f32[128,128], index: 3, kind: output, shape index: {}]  }
   0x1   :  { %v35_v0 = vld [vmem:[%s519_s1 + $0x10] sm:$0x3]  ;;  %v346_v4 = vld [vmem:[%s519_s1 + $0x8] sm:$0xff]  ;;  %v345_v5 = vld [vmem:[%s519_s1] sm:$0xff] }
   0x2   :  { %v89_v1 = vunpack.c.l.b16 %v35_v0  ;;  %v337_v6 = vld [vmem:[%s521_s0] sm:$0xff]  ;;  %v339_v7 = vld [vmem:[%s521_s0 + $0x10] sm:$0xff]  ;;  %v338_v10 = vld [vmem:[%s521_s0 + $0x8] sm:$0xff] }
   0x3   :  { %v341_v8 = vld [vmem:[%s521_s0 + $0x20] sm:$0xff]  ;;  %v343_v9 = vld [vmem:[%s521_s0 + $0x30] sm:$0xff]  ;;  %v340_v11 = vld [vmem:[%s521_s0 + $0x18] sm:$0xff] }
   0x4   :  { %v92_v2 = vpack.c.b16 %v89_v1, %v89_v1  ;;  %v342_v12 = vld [vmem:[%s521_s0 + $0x28] sm:$0xff]  ;;  %v344_v13 = vld [vmem:[%s521_s0 + $0x38] sm:$0xff]  ;;  %v453_v14 = vld [vmem:[%s520_s2] ss:$0 sm:$0xff] }
   0x6   :  { %v122_v3 = vsel %vm120_vm0, %v92_v2, 0 }
   0x7   :  { %129 = vmatpush.bf16.msra.mxu0 %v122_v3  ;;  %347 = vmatpush.bf16.msra.mxu1 %v122_v3 }
   0x8   :  { %348 = vmatpush.bf16.msra.mxu2 %v122_v3  ;;  %349 = vmatpush.bf16.msra.mxu3 %v122_v3 }
   0xb   :  { %130 = vmatpush.bf16.msra.mxu0 %v346_v4  ;;  %350 = vmatpush.bf16.msra.mxu1 %v346_v4 }
   0xc   :  { %351 = vmatpush.bf16.msra.mxu2 %v346_v4  ;;  %352 = vmatpush.bf16.msra.mxu3 %v346_v4 }
   0xf   :  { %131 = vmatpush.bf16.msra.mxu0 %v345_v5  ;;  %353 = vmatpush.bf16.msra.mxu1 %v345_v5 }
  0x10   :  { %354 = vmatpush.bf16.msra.mxu2 %v345_v5  ;;  %355 = vmatpush.bf16.msra.mxu3 %v345_v5 }
  0x12   :  { %329 = vmatmul.msk.bf16.vlgmr.msra.gmra.mxu0 %vm95_vm1, %v337_v6  ;;  %331 = vmatmul.msk.bf16.vlgmr.msra.gmra.mxu1 %vm95_vm1, %v339_v7 }
  0x13   :  { %333 = vmatmul.msk.bf16.vlgmr.msra.gmra.mxu2 %vm95_vm1, %v341_v8  ;;  %335 = vmatmul.msk.bf16.vlgmr.msra.gmra.mxu3 %vm95_vm1, %v343_v9 }
  0x22   :  { %330 = vmatmul.msk.bf16.gmra.mxu0 %vm95_vm1, %v338_v10  ;;  %332 = vmatmul.msk.bf16.gmra.mxu1 %vm95_vm1, %v340_v11 }
  0x23   :  { %334 = vmatmul.msk.bf16.gmra.mxu2 %vm95_vm1, %v342_v12  ;;  %336 = vmatmul.msk.bf16.gmra.mxu3 %vm95_vm1, %v344_v13 }
  0x8f   :  { %v133_v15 = vpop.f32.mrf.mxu0  ;;  %v143_v16 = vpop.f32.mrf.mxu1 }
  0x90   :  { %v134_v17 = vadd.f32 %v453_v14, %v133_v15  ;;  %v144_v18 = vadd.f32 %v453_v14, %v143_v16 }
  0x92   :  { %v173_v19 = vmul.f32 0.5, %v134_v17  ;;  %v177_v20 = vmul.f32 0.5, %v144_v18 }
  0x94   :  { %357 = vtanh.f32 %v173_v19 }
  0x95   :  { %359 = vtanh.f32 %v177_v20 }
  0x96   :  { %v153_v21 = vpop.f32.mrf.mxu2  ;;  %v163_v22 = vpop.f32.mrf.mxu3 }
  0x97   :  { %v154_v23 = vadd.f32 %v453_v14, %v153_v21  ;;  %v164_v24 = vadd.f32 %v453_v14, %v163_v22  ;;  %v135_v25 = vpop.f32.mrf.mxu0  ;;  %v145_v26 = vpop.f32.mrf.mxu1 }
  0x98   :  { %v136_v27 = vadd.f32 %v453_v14, %v135_v25  ;;  %v146_v28 = vadd.f32 %v453_v14, %v145_v26 }
  0x99   :  { %v181_v29 = vmul.f32 0.5, %v154_v23  ;;  %v185_v30 = vmul.f32 0.5, %v164_v24 }
  0x9a   :  { %v358_v31 = vpop.eup %357  ;;  %v174_v32 = vmul.f32 0.5, %v136_v27  ;;  %v178_v33 = vmul.f32 0.5, %v146_v28 }
  0x9b   :  { %v360_v34 = vpop.eup %359  ;;  %v205_v35 = vmul.f32 0.5, %v358_v31  ;;  %361 = vtanh.f32 %v181_v29 }
  0x9c   :  { %v209_v36 = vmul.f32 0.5, %v360_v34  ;;  %363 = vtanh.f32 %v185_v30 }
  0x9d   :  { %v221_v37 = vadd.f32 0.5, %v205_v35  ;;  %365 = vtanh.f32 %v174_v32 }
  0x9e   :  { %v225_v38 = vadd.f32 0.5, %v209_v36  ;;  %367 = vtanh.f32 %v178_v33  ;;  %v155_v39 = vpop.f32.mrf.mxu2  ;;  %v165_v40 = vpop.f32.mrf.mxu3 }
  0x9f   :  { %v237_v41 = vmax.f32 %v221_v37, 0.0  ;;  %v156_v42 = vadd.f32 %v453_v14, %v155_v39  ;;  %v166_v43 = vadd.f32 %v453_v14, %v165_v40  ;;  %v138_v44 = vpop.f32.mrf.mxu0  ;;  %v148_v45 = vpop.f32.mrf.mxu1 }
  0xa0   :  { %v241_v46 = vmax.f32 %v225_v38, 0.0  ;;  %v139_v47 = vadd.f32 %v453_v14, %v138_v44  ;;  %v149_v48 = vadd.f32 %v453_v14, %v148_v45 }
  0xa1   :  { %v362_v49 = vpop.eup %361  ;;  %v253_v50 = vmin.f32 %v237_v41, 1.0  ;;  %v182_v51 = vmul.f32 0.5, %v156_v42  ;;  %v186_v52 = vmul.f32 0.5, %v166_v43 }
  0xa2   :  { %v364_v53 = vpop.eup %363  ;;  %v257_v54 = vmin.f32 %v241_v46, 1.0  ;;  %v213_v55 = vmul.f32 0.5, %v362_v49  ;;  %v175_v56 = vmul.f32 0.5, %v139_v47  ;;  %v179_v57 = vmul.f32 0.5, %v149_v48 }
  0xa3   :  { %v366_v58 = vpop.eup %365  ;;  %269 = vst [vmem:[%s522_s3] sm:$0xff] %v253_v50  ;;  %v217_v59 = vmul.f32 0.5, %v364_v53  ;;  %369 = vtanh.f32 %v182_v51 }
  0xa4   :  { %v368_v60 = vpop.eup %367  ;;  %273 = vst [vmem:[%s522_s3 + $0x20] sm:$0xff] %v257_v54  ;;  %v229_v61 = vadd.f32 0.5, %v213_v55  ;;  %v206_v62 = vmul.f32 0.5, %v366_v58  ;;  %371 = vtanh.f32 %v186_v52 }
  0xa5   :  { %v233_v63 = vadd.f32 0.5, %v217_v59  ;;  %v210_v0 = vmul.f32 0.5, %v368_v60  ;;  %373 = vtanh.f32 %v175_v56 }
  0xa6   :  { %v245_v1 = vmax.f32 %v229_v61, 0.0  ;;  %v222_v2 = vadd.f32 0.5, %v206_v62  ;;  %375 = vtanh.f32 %v179_v57  ;;  %v158_v3 = vpop.f32.mrf.mxu2  ;;  %v168_v4 = vpop.f32.mrf.mxu3 }
  0xa7   :  { %v249_v5 = vmax.f32 %v233_v63, 0.0  ;;  %v226_v6 = vadd.f32 0.5, %v210_v0  ;;  %v159_v7 = vadd.f32 %v453_v14, %v158_v3  ;;  %v169_v8 = vadd.f32 %v453_v14, %v168_v4  ;;  %v140_v9 = vpop.f32.mrf.mxu0  ;;  %v150_v10 = vpop.f32.mrf.mxu1 }
  0xa8   :  { %v261_v11 = vmin.f32 %v245_v1, 1.0  ;;  %v238_v12 = vmax.f32 %v222_v2, 0.0  ;;  %v141_v13 = vadd.f32 %v453_v14, %v140_v9  ;;  %v151_v15 = vadd.f32 %v453_v14, %v150_v10 }
  0xa9   :  { %v370_v16 = vpop.eup %369  ;;  %v265_v17 = vmin.f32 %v249_v5, 1.0  ;;  %v242_v18 = vmax.f32 %v226_v6, 0.0  ;;  %v183_v19 = vmul.f32 0.5, %v159_v7  ;;  %v187_v20 = vmul.f32 0.5, %v169_v8 }
  0xaa   :  { %v372_v21 = vpop.eup %371  ;;  %277 = vst [vmem:[%s522_s3 + $0x40] sm:$0xff] %v261_v11  ;;  %v254_v22 = vmin.f32 %v238_v12, 1.0  ;;  %v214_v23 = vmul.f32 0.5, %v370_v16  ;;  %v176_v24 = vmul.f32 0.5, %v141_v13  ;;  %v180_v25 = vmul.f32 0.5, %v151_v15 }
  0xab   :  { %v374_v26 = vpop.eup %373  ;;  %281 = vst [vmem:[%s522_s3 + $0x60] sm:$0xff] %v265_v17  ;;  %v258_v27 = vmin.f32 %v242_v18, 1.0  ;;  %v218_v28 = vmul.f32 0.5, %v372_v21  ;;  %377 = vtanh.f32 %v183_v19 }
  0xac   :  { %v376_v29 = vpop.eup %375  ;;  %270 = vst [vmem:[%s522_s3 + $0x8] sm:$0xff] %v254_v22  ;;  %v230_v30 = vadd.f32 0.5, %v214_v23  ;;  %v207_v31 = vmul.f32 0.5, %v374_v26  ;;  %379 = vtanh.f32 %v187_v20 }
  0xad   :  { %274 = vst [vmem:[%s522_s3 + $0x28] sm:$0xff] %v258_v27  ;;  %v234_v32 = vadd.f32 0.5, %v218_v28  ;;  %v211_v33 = vmul.f32 0.5, %v376_v29  ;;  %381 = vtanh.f32 %v176_v24 }
  0xae   :  { %v246_v34 = vmax.f32 %v230_v30, 0.0  ;;  %v223_v35 = vadd.f32 0.5, %v207_v31  ;;  %383 = vtanh.f32 %v180_v25  ;;  %v160_v36 = vpop.f32.mrf.mxu2  ;;  %v170_v37 = vpop.f32.mrf.mxu3 }
  0xaf   :  { %v250_v38 = vmax.f32 %v234_v32, 0.0  ;;  %v227_v39 = vadd.f32 0.5, %v211_v33  ;;  %v161_v40 = vadd.f32 %v453_v14, %v160_v36  ;;  %v171_v41 = vadd.f32 %v453_v14, %v170_v37 }
  0xb0   :  { %v262_v42 = vmin.f32 %v246_v34, 1.0  ;;  %v239_v43 = vmax.f32 %v223_v35, 0.0 }
  0xb1   :  { %v378_v44 = vpop.eup %377  ;;  %v266_v45 = vmin.f32 %v250_v38, 1.0  ;;  %v243_v46 = vmax.f32 %v227_v39, 0.0  ;;  %v184_v47 = vmul.f32 0.5, %v161_v40  ;;  %v188_v48 = vmul.f32 0.5, %v171_v41 }
  0xb2   :  { %v380_v49 = vpop.eup %379  ;;  %278 = vst [vmem:[%s522_s3 + $0x48] sm:$0xff] %v262_v42  ;;  %v255_v50 = vmin.f32 %v239_v43, 1.0  ;;  %v215_v51 = vmul.f32 0.5, %v378_v44 }
  0xb3   :  { %v382_v52 = vpop.eup %381  ;;  %282 = vst [vmem:[%s522_s3 + $0x68] sm:$0xff] %v266_v45  ;;  %v259_v14 = vmin.f32 %v243_v46, 1.0  ;;  %v219_v53 = vmul.f32 0.5, %v380_v49  ;;  %385 = vtanh.f32 %v184_v47 }
  0xb4   :  { %v384_v54 = vpop.eup %383  ;;  %271 = vst [vmem:[%s522_s3 + $0x10] sm:$0xff] %v255_v50  ;;  %v231_v55 = vadd.f32 0.5, %v215_v51  ;;  %v208_v56 = vmul.f32 0.5, %v382_v52  ;;  %387 = vtanh.f32 %v188_v48 }
  0xb5   :  { %275 = vst [vmem:[%s522_s3 + $0x30] sm:$0xff] %v259_v14  ;;  %v235_v57 = vadd.f32 0.5, %v219_v53  ;;  %v212_v58 = vmul.f32 0.5, %v384_v54 }
  0xb6   :  { %v247_v59 = vmax.f32 %v231_v55, 0.0  ;;  %v224_v60 = vadd.f32 0.5, %v208_v56 }
  0xb7   :  { %v251_v61 = vmax.f32 %v235_v57, 0.0  ;;  %v228_v62 = vadd.f32 0.5, %v212_v58 }
  0xb8   :  { %v263_v63 = vmin.f32 %v247_v59, 1.0  ;;  %v240_v0 = vmax.f32 %v224_v60, 0.0 }
  0xb9   :  { %v386_v1 = vpop.eup %385  ;;  %v267_v2 = vmin.f32 %v251_v61, 1.0  ;;  %v244_v3 = vmax.f32 %v228_v62, 0.0 }
  0xba   :  { %v388_v4 = vpop.eup %387  ;;  %279 = vst [vmem:[%s522_s3 + $0x50] sm:$0xff] %v263_v63  ;;  %v256_v5 = vmin.f32 %v240_v0, 1.0  ;;  %v216_v6 = vmul.f32 0.5, %v386_v1 }
  0xbb   :  { %283 = vst [vmem:[%s522_s3 + $0x70] sm:$0xff] %v267_v2  ;;  %v260_v7 = vmin.f32 %v244_v3, 1.0  ;;  %v220_v8 = vmul.f32 0.5, %v388_v4 }
  0xbc   :  { %272 = vst [vmem:[%s522_s3 + $0x18] sm:$0xff] %v256_v5  ;;  %v232_v9 = vadd.f32 0.5, %v216_v6 }
  0xbd   :  { %276 = vst [vmem:[%s522_s3 + $0x38] sm:$0xff] %v260_v7  ;;  %v236_v10 = vadd.f32 0.5, %v220_v8 }
  0xbe   :  { %v248_v11 = vmax.f32 %v232_v9, 0.0 }
  0xbf   :  { %v252_v12 = vmax.f32 %v236_v10, 0.0 }
  0xc0   :  { %v264_v13 = vmin.f32 %v248_v11, 1.0 }
  0xc1   :  { %v268_v15 = vmin.f32 %v252_v12, 1.0 }
  0xc2   :  { %280 = vst [vmem:[%s522_s3 + $0x58] sm:$0xff] %v264_v13 }
  0xc3   :  { %284 = vst [vmem:[%s522_s3 + $0x78] sm:$0xff] %v268_v15 }

</bundles_post_ra>
